<compile_context>
chip_gen: v6e
topology: v6e:2x2x1
jax: 0.10.0
libtpu: 0.0.40
codegen_flags: <defaults>
</compile_context>

<pallas_src>
import jax
import jax.numpy as jnp
from jax.experimental import pallas as pl
from jax.experimental.pallas import tpu as pltpu


def mamba_block_kernel(
    x_ref,       # (R, D_in)   R = batch_pack * S, rows ordered (batch, time)
    t_ref,       # (R, 1)      int32: time index of each row within its sequence
    w_in_ref,    # (D_in, 2H)  fused in_proj weight (transposed)
    b_in_ref,    # (1, 2H)
    w_conv_ref,  # (K, H)      depthwise taps: w_conv[j, c] = conv.weight[c, 0, j]
    b_conv_ref,  # (1, H)
    w_ssm_ref,   # (H, Dst)    ssm_proj weight (transposed)
    b_ssm_ref,   # (1, Dst)
    m_taps_ref,  # (S, Dst)    causal SSM taps m_k = B * ((A^T)^k C)
    d_vec_ref,   # (1, H)
    w_out_ref,   # (H, D_pad)  out_proj weight (transposed, lane-padded)
    b_out_ref,   # (1, D_pad)
    o_ref,       # (R, D_pad)
):
    f32 = jnp.float32
    x = x_ref[...].astype(f32)                     # (R, D_in)
    t_idx = t_ref[...]                             # (R, 1) int32, time within seq
    H = d_vec_ref.shape[-1]
    K = w_conv_ref.shape[0]
    S = m_taps_ref.shape[0]

    # ---- fused in_proj ----------------------------------------------------
    xz = jnp.dot(x, w_in_ref[...].astype(f32),
                 preferred_element_type=f32) + b_in_ref[...].astype(f32)   # (R, 2H)
    xh = xz[:, :H]                                 # (R, H)
    gate = xz[:, H:]                               # (R, H)

    # ---- causal depthwise conv: out[t] = b + sum_j w[j] * xh[t-(K-1-j)] ----
    wc = w_conv_ref[...].astype(f32)               # (K, H)
    acc = xh * wc[K - 1:K, :] + b_conv_ref[...].astype(f32)      # shift-0 tap
    for j in range(K - 1):                         # static unroll (K = 4)
        shift = K - 1 - j
        shifted = pltpu.roll(xh, shift, axis=0)    # row r <- row r - shift
        shifted = jnp.where(t_idx >= shift, shifted, 0.0)        # per-seq causality
        acc = acc + wc[j:j + 1, :] * shifted
    xc = acc * jax.nn.sigmoid(acc)                 # SiLU, (R, H)

    # ---- ssm_proj ----------------------------------------------------------
    u = jnp.dot(xc, w_ssm_ref[...].astype(f32),
                preferred_element_type=f32) + b_ssm_ref[...].astype(f32)   # (R, Dst)

    # ---- causal SSM contraction:  c_t = sum_k m_k . u_{t-k} ----------------
    # Equivalent to h_t = A h_{t-1} + u_t*B, c_t = C.h_t (h_0 = 0), but with
    # no serial MXU dependency chain and no per-step scratch stores.
    m = m_taps_ref[...].astype(f32)                # (S, Dst)
    c = jnp.sum(u * m[0:1, :], axis=-1, keepdims=True)           # k = 0 term
    for k in range(1, S):                          # S-1 independent taps
        shifted_u = pltpu.roll(u, k, axis=0)
        term = jnp.sum(shifted_u * m[k:k + 1, :], axis=-1, keepdims=True)
        c = c + jnp.where(t_idx >= k, term, 0.0)

    ssm_out = (c + d_vec_ref[...].astype(f32)) * xc              # (R, H)

    # ---- gate + out_proj ----------------------------------------------------
    y = ssm_out * (gate * jax.nn.sigmoid(gate))    # dropout = identity (eval)
    out = jnp.dot(y, w_out_ref[...].astype(f32),
                  preferred_element_type=f32) + b_out_ref[...].astype(f32)  # (R, D_pad)
    o_ref[...] = out.astype(o_ref.dtype)           # lane-dense (D_pad % 128 == 0)


def mamba_block_forward(x, params, *, batch_pack=None):
    """Fused MambaBlock forward.

    params = (w_in, b_in, w_conv, b_conv, w_ssm, b_ssm,
              a_t, b_vec, c_vec, d_vec, w_out, b_out)
    """
    (w_in, b_in, w_conv, b_conv, w_ssm, b_ssm,
     a_t, b_vec, c_vec, d_vec, w_out, b_out) = params
    N, S, D_in = x.shape
    H = d_vec.shape[-1]
    Dst = a_t.shape[0]
    K = w_conv.shape[0]

    # Batch packing: fold `batch_pack` sequences into each grid step (grows
    # the M dim of every matmul).  Default folds the whole small batch into a
    # single step (best on v5e/v6e, 1 TC); on v7x pass batch_pack = N // 2 so
    # both TensorCores get a grid step.
    if batch_pack is None:
        batch_pack = max(1, min(N, 8))
    P = int(batch_pack)
    Np = ((N + P - 1) // P) * P
    if Np != N:
        x = jnp.concatenate([x, jnp.zeros((Np - N, S, D_in), x.dtype)], axis=0)
    n_blocks = Np // P
    R = P * S

    # Causal SSM taps: m_k = B * ((A^T)^k C), k = 0..S-1 (precomputed once).
    v = c_vec.reshape(Dst).astype(jnp.float32)
    bv = b_vec.reshape(Dst).astype(jnp.float32)
    at = a_t.astype(jnp.float32)
    taps = []
    for _ in range(S):
        taps.append(bv * v)
        v = at @ v
    m_taps = jnp.stack(taps, axis=0)                              # (S, Dst)

    # Lane-dense output: pad out_proj to a multiple of 128 output lanes.
    D_pad = max(128, ((D_in + 127) // 128) * 128)
    w_out_p = jnp.zeros((H, D_pad), w_out.dtype).at[:, :D_in].set(w_out)
    b_out_p = jnp.zeros((1, D_pad), b_out.dtype).at[:, :D_in].set(b_out)

    # Flatten (batch, time) into the row (M) dimension; per-row time index.
    x2 = x.reshape(Np * S, D_in)
    t_ids = jnp.tile(jnp.arange(S, dtype=jnp.int32), Np).reshape(Np * S, 1)

    weights = [w_in, b_in, w_conv, b_conv, w_ssm, b_ssm,
               m_taps, d_vec, w_out_p, b_out_p]

    def whole(a):  # full-array VMEM block, resident across grid steps
        return pl.BlockSpec(a.shape, lambda n: (0, 0))

    flops = 2 * Np * S * (D_in * 2 * H + H * Dst + S * Dst + H * D_pad) \
        + 10 * Np * S * (2 * H + K * H + S)
    bytes_accessed = 4 * (x2.size + t_ids.size + Np * S * D_pad
                          + sum(int(w.size) for w in weights))
    cost = pl.CostEstimate(flops=int(flops),
                           transcendentals=int(2 * Np * S * H),
                           bytes_accessed=int(bytes_accessed))

    out = pl.pallas_call(
        mamba_block_kernel,
        out_shape=jax.ShapeDtypeStruct((Np * S, D_pad), x.dtype),
        grid=(n_blocks,),
        in_specs=[pl.BlockSpec((R, D_in), lambda n: (n, 0)),
                  pl.BlockSpec((R, 1), lambda n: (n, 0))]
                 + [whole(a) for a in weights],
        out_specs=pl.BlockSpec((R, D_pad), lambda n: (n, 0)),
        compiler_params=pltpu.CompilerParams(
            dimension_semantics=("parallel",)),
        cost_estimate=cost,
    )(x2, t_ids, *weights)

    return out[:, :D_in].reshape(Np, S, D_in)[:N]


if __name__ == "__main__":
    # MambaBlock(input_size=16, hidden_size=32, d_state=32, d_conv=4), eval mode.
    jax.config.update("jax_default_matmul_precision", "highest")

    N, S, D_in, H, Dst, K = 2, 8, 16, 32, 32, 4
    key = jax.random.PRNGKey(0)
    ks = jax.random.split(key, 16)

    x = jax.random.normal(ks[0], (N, S, D_in), jnp.float32)

    w_in = 0.1 * jax.random.normal(ks[1], (D_in, 2 * H), jnp.float32)
    b_in = 0.1 * jax.random.normal(ks[2], (1, 2 * H), jnp.float32)
    w_conv = 0.2 * jax.random.normal(ks[3], (K, H), jnp.float32)
    b_conv = 0.1 * jax.random.normal(ks[4], (1, H), jnp.float32)
    w_ssm = 0.1 * jax.random.normal(ks[5], (H, Dst), jnp.float32)
    b_ssm = 0.1 * jax.random.normal(ks[6], (1, Dst), jnp.float32)
    A = -jnp.eye(Dst, dtype=jnp.float32) \
        + 0.05 * jax.random.normal(ks[7], (Dst, Dst), jnp.float32)
    a_t = A.T
    b_vec = 0.01 * jax.random.normal(ks[8], (1, Dst), jnp.float32)
    c_vec = 0.01 * jax.random.normal(ks[9], (1, Dst), jnp.float32)
    d_vec = jnp.ones((1, H), jnp.float32) \
        + 0.1 * jax.random.normal(ks[10], (1, H), jnp.float32)
    w_out = 0.1 * jax.random.normal(ks[11], (H, D_in), jnp.float32)
    b_out = 0.1 * jax.random.normal(ks[12], (1, D_in), jnp.float32)

    params = (w_in, b_in, w_conv, b_conv, w_ssm, b_ssm,
              a_t, b_vec, c_vec, d_vec, w_out, b_out)

    y = mamba_block_forward(x, params)
    y = jax.block_until_ready(y)

    # ---- pure-JAX reference of the PyTorch forward (eval mode) -------------
    def ref_forward(x):
        xz = x @ w_in + b_in                                   # (N, S, 2H)
        xh, gate = xz[..., :H], xz[..., H:]
        acc = jnp.zeros_like(xh)
        for j in range(K):
            shift = K - 1 - j
            shifted = jnp.pad(xh, ((0, 0), (shift, 0), (0, 0)))[:, :S, :]
            acc = acc + w_conv[j] * shifted
        acc = acc + b_conv
        xc = acc * jax.nn.sigmoid(acc)                         # SiLU
        u = xc @ w_ssm + b_ssm                                 # (N, S, Dst)
        h = jnp.zeros((N, Dst), jnp.float32)
        outs = []
        for t in range(S):
            h = h @ a_t + u[:, t, :] * b_vec                   # h_t = A h_{t-1} + u_t*B
            c = jnp.sum(h * c_vec, axis=-1, keepdims=True)     # C . h_t
            outs.append((c + d_vec) * xc[:, t, :])
        ssm_out = jnp.stack(outs, axis=1)                      # (N, S, H)
        yv = ssm_out * (gate * jax.nn.sigmoid(gate))           # dropout = identity
        return yv @ w_out + b_out

    ref = ref_forward(x)
    err = float(jnp.max(jnp.abs(y - ref)))
    assert jnp.allclose(y, ref, atol=1e-3, rtol=1e-3), err

    print("KERNEL_OK")
</pallas_src>

<mosaic_0001>
module attributes {stable_mosaic.version = 11 : i64} {
  func.func @mamba_block_kernel(%arg0: i32, %arg1: memref<16x16xf32, #tpu.memory_space<vmem>>, %arg2: memref<16x1xi32, #tpu.memory_space<vmem>>, %arg3: memref<16x64xf32, #tpu.memory_space<vmem>>, %arg4: memref<1x64xf32, #tpu.memory_space<vmem>>, %arg5: memref<4x32xf32, #tpu.memory_space<vmem>>, %arg6: memref<1x32xf32, #tpu.memory_space<vmem>>, %arg7: memref<32x32xf32, #tpu.memory_space<vmem>>, %arg8: memref<1x32xf32, #tpu.memory_space<vmem>>, %arg9: memref<8x32xf32, #tpu.memory_space<vmem>>, %arg10: memref<1x32xf32, #tpu.memory_space<vmem>>, %arg11: memref<32x128xf32, #tpu.memory_space<vmem>>, %arg12: memref<1x128xf32, #tpu.memory_space<vmem>>, %arg13: memref<16x128xf32, #tpu.memory_space<vmem>>) attributes {dimension_semantics = [#tpu.dimension_semantics<parallel>], iteration_bounds = array<i64: 1>, scalar_prefetch = 0 : i64, scratch_operands = 0 : i64, tpu.core_type = #tpu.core_type<tc>, window_params = [{transform_indices = @transform_0, window_bounds = array<i64: 16, 16>}, {transform_indices = @transform_1, window_bounds = array<i64: 16, 1>}, {pipeline_mode = #tpu.pipeline_mode<synchronous>, transform_indices = @transform_2, window_bounds = array<i64: 16, 64>}, {pipeline_mode = #tpu.pipeline_mode<synchronous>, transform_indices = @transform_3, window_bounds = array<i64: 1, 64>}, {pipeline_mode = #tpu.pipeline_mode<synchronous>, transform_indices = @transform_4, window_bounds = array<i64: 4, 32>}, {pipeline_mode = #tpu.pipeline_mode<synchronous>, transform_indices = @transform_5, window_bounds = array<i64: 1, 32>}, {pipeline_mode = #tpu.pipeline_mode<synchronous>, transform_indices = @transform_6, window_bounds = array<i64: 32, 32>}, {pipeline_mode = #tpu.pipeline_mode<synchronous>, transform_indices = @transform_7, window_bounds = array<i64: 1, 32>}, {pipeline_mode = #tpu.pipeline_mode<synchronous>, transform_indices = @transform_8, window_bounds = array<i64: 8, 32>}, {pipeline_mode = #tpu.pipeline_mode<synchronous>, transform_indices = @transform_9, window_bounds = array<i64: 1, 32>}, {pipeline_mode = #tpu.pipeline_mode<synchronous>, transform_indices = @transform_10, window_bounds = array<i64: 32, 128>}, {pipeline_mode = #tpu.pipeline_mode<synchronous>, transform_indices = @transform_11, window_bounds = array<i64: 1, 128>}, {transform_indices = @transform_12, window_bounds = array<i64: 16, 128>}]} {
    %c0 = arith.constant 0 : index
    %c0_0 = arith.constant 0 : index
    %0 = vector.load %arg1[%c0, %c0_0] : memref<16x16xf32, #tpu.memory_space<vmem>>, vector<16x16xf32>
    %c0_1 = arith.constant 0 : index
    %c0_2 = arith.constant 0 : index
    %1 = vector.load %arg2[%c0_1, %c0_2] : memref<16x1xi32, #tpu.memory_space<vmem>>, vector<16x1xi32>
    %c0_3 = arith.constant 0 : index
    %c0_4 = arith.constant 0 : index
    %2 = vector.load %arg3[%c0_3, %c0_4] : memref<16x64xf32, #tpu.memory_space<vmem>>, vector<16x64xf32>
    %cst = arith.constant dense<0.000000e+00> : vector<16x64xf32>
    %3 = tpu.matmul %0, %2, %cst {dimension_numbers = #tpu.dot_dimension_numbers<[1], [0], [0], [1], [0, 0, 1, 1], [], []>, precision = #tpu.contract_precision<fp32>} : vector<16x16xf32>, vector<16x64xf32>, vector<16x64xf32> -> vector<16x64xf32>
    %c0_5 = arith.constant 0 : index
    %c0_6 = arith.constant 0 : index
    %4 = vector.load %arg4[%c0_5, %c0_6] : memref<1x64xf32, #tpu.memory_space<vmem>>, vector<1x64xf32>
    %5 = vector.broadcast %4 : vector<1x64xf32> to vector<16x64xf32>
    %6 = arith.addf %3, %5 : vector<16x64xf32>
    %7 = vector.extract_strided_slice %6 {offsets = [0, 0], sizes = [16, 32], strides = [1, 1]} : vector<16x64xf32> to vector<16x32xf32>
    %8 = vector.extract_strided_slice %6 {offsets = [0, 32], sizes = [16, 32], strides = [1, 1]} : vector<16x64xf32> to vector<16x32xf32>
    %c0_7 = arith.constant 0 : index
    %c0_8 = arith.constant 0 : index
    %9 = vector.load %arg5[%c0_7, %c0_8] : memref<4x32xf32, #tpu.memory_space<vmem>>, vector<4x32xf32>
    %10 = vector.extract_strided_slice %9 {offsets = [3, 0], sizes = [1, 32], strides = [1, 1]} : vector<4x32xf32> to vector<1x32xf32>
    %11 = vector.broadcast %10 : vector<1x32xf32> to vector<16x32xf32>
    %12 = arith.mulf %7, %11 : vector<16x32xf32>
    %c0_9 = arith.constant 0 : index
    %c0_10 = arith.constant 0 : index
    %13 = vector.load %arg6[%c0_9, %c0_10] : memref<1x32xf32, #tpu.memory_space<vmem>>, vector<1x32xf32>
    %14 = vector.broadcast %13 : vector<1x32xf32> to vector<16x32xf32>
    %15 = arith.addf %12, %14 : vector<16x32xf32>
    %c3_i32 = arith.constant 3 : i32
    %16 = tpu.dynamic_rotate %7 by %c3_i32 dim 0 : vector<16x32xf32>, i32 -> vector<16x32xf32>
    %c3_i32_11 = arith.constant 3 : i32
    %17 = vector.broadcast %c3_i32_11 : i32 to vector<16x1xi32>
    %18 = arith.cmpi sge, %1, %17 : vector<16x1xi32>
    %cst_12 = arith.constant 0.000000e+00 : f32
    %19 = vector.shape_cast %18 : vector<16x1xi1> to vector<16x1xi1>
    %20 = vector.broadcast %19 : vector<16x1xi1> to vector<16x32xi1>
    %21 = vector.broadcast %cst_12 : f32 to vector<16x32xf32>
    %22 = arith.select %20, %16, %21 : vector<16x32xi1>, vector<16x32xf32>
    %23 = vector.extract_strided_slice %9 {offsets = [0, 0], sizes = [1, 32], strides = [1, 1]} : vector<4x32xf32> to vector<1x32xf32>
    %24 = vector.broadcast %23 : vector<1x32xf32> to vector<16x32xf32>
    %25 = arith.mulf %24, %22 : vector<16x32xf32>
    %26 = arith.addf %15, %25 : vector<16x32xf32>
    %c2_i32 = arith.constant 2 : i32
    %27 = tpu.dynamic_rotate %7 by %c2_i32 dim 0 : vector<16x32xf32>, i32 -> vector<16x32xf32>
    %c2_i32_13 = arith.constant 2 : i32
    %28 = vector.broadcast %c2_i32_13 : i32 to vector<16x1xi32>
    %29 = arith.cmpi sge, %1, %28 : vector<16x1xi32>
    %cst_14 = arith.constant 0.000000e+00 : f32
    %30 = vector.shape_cast %29 : vector<16x1xi1> to vector<16x1xi1>
    %31 = vector.broadcast %30 : vector<16x1xi1> to vector<16x32xi1>
    %32 = vector.broadcast %cst_14 : f32 to vector<16x32xf32>
    %33 = arith.select %31, %27, %32 : vector<16x32xi1>, vector<16x32xf32>
    %34 = vector.extract_strided_slice %9 {offsets = [1, 0], sizes = [1, 32], strides = [1, 1]} : vector<4x32xf32> to vector<1x32xf32>
    %35 = vector.broadcast %34 : vector<1x32xf32> to vector<16x32xf32>
    %36 = arith.mulf %35, %33 : vector<16x32xf32>
    %37 = arith.addf %26, %36 : vector<16x32xf32>
    %c1_i32 = arith.constant 1 : i32
    %38 = tpu.dynamic_rotate %7 by %c1_i32 dim 0 : vector<16x32xf32>, i32 -> vector<16x32xf32>
    %c1_i32_15 = arith.constant 1 : i32
    %39 = vector.broadcast %c1_i32_15 : i32 to vector<16x1xi32>
    %40 = arith.cmpi sge, %1, %39 : vector<16x1xi32>
    %cst_16 = arith.constant 0.000000e+00 : f32
    %41 = vector.shape_cast %40 : vector<16x1xi1> to vector<16x1xi1>
    %42 = vector.broadcast %41 : vector<16x1xi1> to vector<16x32xi1>
    %43 = vector.broadcast %cst_16 : f32 to vector<16x32xf32>
    %44 = arith.select %42, %38, %43 : vector<16x32xi1>, vector<16x32xf32>
    %45 = vector.extract_strided_slice %9 {offsets = [2, 0], sizes = [1, 32], strides = [1, 1]} : vector<4x32xf32> to vector<1x32xf32>
    %46 = vector.broadcast %45 : vector<1x32xf32> to vector<16x32xf32>
    %47 = arith.mulf %46, %44 : vector<16x32xf32>
    %48 = arith.addf %37, %47 : vector<16x32xf32>
    %49 = arith.negf %48 : vector<16x32xf32>
    %50 = math.exp %49 : vector<16x32xf32>
    %cst_17 = arith.constant 1.000000e+00 : f32
    %51 = vector.broadcast %cst_17 : f32 to vector<16x32xf32>
    %52 = arith.addf %51, %50 : vector<16x32xf32>
    %53 = arith.divf %51, %52 : vector<16x32xf32>
    %54 = arith.mulf %48, %53 : vector<16x32xf32>
    %c0_18 = arith.constant 0 : index
    %c0_19 = arith.constant 0 : index
    %55 = vector.load %arg7[%c0_18, %c0_19] : memref<32x32xf32, #tpu.memory_space<vmem>>, vector<32x32xf32>
    %cst_20 = arith.constant dense<0.000000e+00> : vector<16x32xf32>
    %56 = tpu.matmul %54, %55, %cst_20 {dimension_numbers = #tpu.dot_dimension_numbers<[1], [0], [0], [1], [0, 0, 1, 1], [], []>, precision = #tpu.contract_precision<fp32>} : vector<16x32xf32>, vector<32x32xf32>, vector<16x32xf32> -> vector<16x32xf32>
    %c0_21 = arith.constant 0 : index
    %c0_22 = arith.constant 0 : index
    %57 = vector.load %arg8[%c0_21, %c0_22] : memref<1x32xf32, #tpu.memory_space<vmem>>, vector<1x32xf32>
    %58 = vector.broadcast %57 : vector<1x32xf32> to vector<16x32xf32>
    %59 = arith.addf %56, %58 : vector<16x32xf32>
    %c0_23 = arith.constant 0 : index
    %c0_24 = arith.constant 0 : index
    %60 = vector.load %arg9[%c0_23, %c0_24] : memref<8x32xf32, #tpu.memory_space<vmem>>, vector<8x32xf32>
    %61 = vector.extract_strided_slice %60 {offsets = [0, 0], sizes = [1, 32], strides = [1, 1]} : vector<8x32xf32> to vector<1x32xf32>
    %62 = vector.broadcast %61 : vector<1x32xf32> to vector<16x32xf32>
    %63 = arith.mulf %59, %62 : vector<16x32xf32>
    %cst_25 = arith.constant dense<0.000000e+00> : vector<16xf32>
    %64 = vector.multi_reduction <add>, %63, %cst_25 [1] : vector<16x32xf32> to vector<16xf32>
    %65 = vector.shape_cast %64 : vector<16xf32> to vector<16x1xf32>
    %c1_i32_26 = arith.constant 1 : i32
    %66 = tpu.dynamic_rotate %59 by %c1_i32_26 dim 0 : vector<16x32xf32>, i32 -> vector<16x32xf32>
    %67 = vector.extract_strided_slice %60 {offsets = [1, 0], sizes = [1, 32], strides = [1, 1]} : vector<8x32xf32> to vector<1x32xf32>
    %68 = vector.broadcast %67 : vector<1x32xf32> to vector<16x32xf32>
    %69 = arith.mulf %66, %68 : vector<16x32xf32>
    %cst_27 = arith.constant dense<0.000000e+00> : vector<16xf32>
    %70 = vector.multi_reduction <add>, %69, %cst_27 [1] : vector<16x32xf32> to vector<16xf32>
    %71 = vector.shape_cast %70 : vector<16xf32> to vector<16x1xf32>
    %c1_i32_28 = arith.constant 1 : i32
    %72 = vector.broadcast %c1_i32_28 : i32 to vector<16x1xi32>
    %73 = arith.cmpi sge, %1, %72 : vector<16x1xi32>
    %cst_29 = arith.constant 0.000000e+00 : f32
    %74 = vector.broadcast %cst_29 : f32 to vector<16x1xf32>
    %75 = arith.select %73, %71, %74 : vector<16x1xi1>, vector<16x1xf32>
    %76 = arith.addf %65, %75 : vector<16x1xf32>
    %c2_i32_30 = arith.constant 2 : i32
    %77 = tpu.dynamic_rotate %59 by %c2_i32_30 dim 0 : vector<16x32xf32>, i32 -> vector<16x32xf32>
    %78 = vector.extract_strided_slice %60 {offsets = [2, 0], sizes = [1, 32], strides = [1, 1]} : vector<8x32xf32> to vector<1x32xf32>
    %79 = vector.broadcast %78 : vector<1x32xf32> to vector<16x32xf32>
    %80 = arith.mulf %77, %79 : vector<16x32xf32>
    %cst_31 = arith.constant dense<0.000000e+00> : vector<16xf32>
    %81 = vector.multi_reduction <add>, %80, %cst_31 [1] : vector<16x32xf32> to vector<16xf32>
    %82 = vector.shape_cast %81 : vector<16xf32> to vector<16x1xf32>
    %c2_i32_32 = arith.constant 2 : i32
    %83 = vector.broadcast %c2_i32_32 : i32 to vector<16x1xi32>
    %84 = arith.cmpi sge, %1, %83 : vector<16x1xi32>
    %cst_33 = arith.constant 0.000000e+00 : f32
    %85 = vector.broadcast %cst_33 : f32 to vector<16x1xf32>
    %86 = arith.select %84, %82, %85 : vector<16x1xi1>, vector<16x1xf32>
    %87 = arith.addf %76, %86 : vector<16x1xf32>
    %c3_i32_34 = arith.constant 3 : i32
    %88 = tpu.dynamic_rotate %59 by %c3_i32_34 dim 0 : vector<16x32xf32>, i32 -> vector<16x32xf32>
    %89 = vector.extract_strided_slice %60 {offsets = [3, 0], sizes = [1, 32], strides = [1, 1]} : vector<8x32xf32> to vector<1x32xf32>
    %90 = vector.broadcast %89 : vector<1x32xf32> to vector<16x32xf32>
    %91 = arith.mulf %88, %90 : vector<16x32xf32>
    %cst_35 = arith.constant dense<0.000000e+00> : vector<16xf32>
    %92 = vector.multi_reduction <add>, %91, %cst_35 [1] : vector<16x32xf32> to vector<16xf32>
    %93 = vector.shape_cast %92 : vector<16xf32> to vector<16x1xf32>
    %c3_i32_36 = arith.constant 3 : i32
    %94 = vector.broadcast %c3_i32_36 : i32 to vector<16x1xi32>
    %95 = arith.cmpi sge, %1, %94 : vector<16x1xi32>
    %cst_37 = arith.constant 0.000000e+00 : f32
    %96 = vector.broadcast %cst_37 : f32 to vector<16x1xf32>
    %97 = arith.select %95, %93, %96 : vector<16x1xi1>, vector<16x1xf32>
    %98 = arith.addf %87, %97 : vector<16x1xf32>
    %c4_i32 = arith.constant 4 : i32
    %99 = tpu.dynamic_rotate %59 by %c4_i32 dim 0 : vector<16x32xf32>, i32 -> vector<16x32xf32>
    %100 = vector.extract_strided_slice %60 {offsets = [4, 0], sizes = [1, 32], strides = [1, 1]} : vector<8x32xf32> to vector<1x32xf32>
    %101 = vector.broadcast %100 : vector<1x32xf32> to vector<16x32xf32>
    %102 = arith.mulf %99, %101 : vector<16x32xf32>
    %cst_38 = arith.constant dense<0.000000e+00> : vector<16xf32>
    %103 = vector.multi_reduction <add>, %102, %cst_38 [1] : vector<16x32xf32> to vector<16xf32>
    %104 = vector.shape_cast %103 : vector<16xf32> to vector<16x1xf32>
    %c4_i32_39 = arith.constant 4 : i32
    %105 = vector.broadcast %c4_i32_39 : i32 to vector<16x1xi32>
    %106 = arith.cmpi sge, %1, %105 : vector<16x1xi32>
    %cst_40 = arith.constant 0.000000e+00 : f32
    %107 = vector.broadcast %cst_40 : f32 to vector<16x1xf32>
    %108 = arith.select %106, %104, %107 : vector<16x1xi1>, vector<16x1xf32>
    %109 = arith.addf %98, %108 : vector<16x1xf32>
    %c5_i32 = arith.constant 5 : i32
    %110 = tpu.dynamic_rotate %59 by %c5_i32 dim 0 : vector<16x32xf32>, i32 -> vector<16x32xf32>
    %111 = vector.extract_strided_slice %60 {offsets = [5, 0], sizes = [1, 32], strides = [1, 1]} : vector<8x32xf32> to vector<1x32xf32>
    %112 = vector.broadcast %111 : vector<1x32xf32> to vector<16x32xf32>
    %113 = arith.mulf %110, %112 : vector<16x32xf32>
    %cst_41 = arith.constant dense<0.000000e+00> : vector<16xf32>
    %114 = vector.multi_reduction <add>, %113, %cst_41 [1] : vector<16x32xf32> to vector<16xf32>
    %115 = vector.shape_cast %114 : vector<16xf32> to vector<16x1xf32>
    %c5_i32_42 = arith.constant 5 : i32
    %116 = vector.broadcast %c5_i32_42 : i32 to vector<16x1xi32>
    %117 = arith.cmpi sge, %1, %116 : vector<16x1xi32>
    %cst_43 = arith.constant 0.000000e+00 : f32
    %118 = vector.broadcast %cst_43 : f32 to vector<16x1xf32>
    %119 = arith.select %117, %115, %118 : vector<16x1xi1>, vector<16x1xf32>
    %120 = arith.addf %109, %119 : vector<16x1xf32>
    %c6_i32 = arith.constant 6 : i32
    %121 = tpu.dynamic_rotate %59 by %c6_i32 dim 0 : vector<16x32xf32>, i32 -> vector<16x32xf32>
    %122 = vector.extract_strided_slice %60 {offsets = [6, 0], sizes = [1, 32], strides = [1, 1]} : vector<8x32xf32> to vector<1x32xf32>
    %123 = vector.broadcast %122 : vector<1x32xf32> to vector<16x32xf32>
    %124 = arith.mulf %121, %123 : vector<16x32xf32>
    %cst_44 = arith.constant dense<0.000000e+00> : vector<16xf32>
    %125 = vector.multi_reduction <add>, %124, %cst_44 [1] : vector<16x32xf32> to vector<16xf32>
    %126 = vector.shape_cast %125 : vector<16xf32> to vector<16x1xf32>
    %c6_i32_45 = arith.constant 6 : i32
    %127 = vector.broadcast %c6_i32_45 : i32 to vector<16x1xi32>
    %128 = arith.cmpi sge, %1, %127 : vector<16x1xi32>
    %cst_46 = arith.constant 0.000000e+00 : f32
    %129 = vector.broadcast %cst_46 : f32 to vector<16x1xf32>
    %130 = arith.select %128, %126, %129 : vector<16x1xi1>, vector<16x1xf32>
    %131 = arith.addf %120, %130 : vector<16x1xf32>
    %c7_i32 = arith.constant 7 : i32
    %132 = tpu.dynamic_rotate %59 by %c7_i32 dim 0 : vector<16x32xf32>, i32 -> vector<16x32xf32>
    %133 = vector.extract_strided_slice %60 {offsets = [7, 0], sizes = [1, 32], strides = [1, 1]} : vector<8x32xf32> to vector<1x32xf32>
    %134 = vector.broadcast %133 : vector<1x32xf32> to vector<16x32xf32>
    %135 = arith.mulf %132, %134 : vector<16x32xf32>
    %cst_47 = arith.constant dense<0.000000e+00> : vector<16xf32>
    %136 = vector.multi_reduction <add>, %135, %cst_47 [1] : vector<16x32xf32> to vector<16xf32>
    %137 = vector.shape_cast %136 : vector<16xf32> to vector<16x1xf32>
    %c7_i32_48 = arith.constant 7 : i32
    %138 = vector.broadcast %c7_i32_48 : i32 to vector<16x1xi32>
    %139 = arith.cmpi sge, %1, %138 : vector<16x1xi32>
    %cst_49 = arith.constant 0.000000e+00 : f32
    %140 = vector.broadcast %cst_49 : f32 to vector<16x1xf32>
    %141 = arith.select %139, %137, %140 : vector<16x1xi1>, vector<16x1xf32>
    %142 = arith.addf %131, %141 : vector<16x1xf32>
    %c0_50 = arith.constant 0 : index
    %c0_51 = arith.constant 0 : index
    %143 = vector.load %arg10[%c0_50, %c0_51] : memref<1x32xf32, #tpu.memory_space<vmem>>, vector<1x32xf32>
    %144 = vector.broadcast %142 : vector<16x1xf32> to vector<16x32xf32>
    %145 = vector.broadcast %143 : vector<1x32xf32> to vector<16x32xf32>
    %146 = arith.addf %144, %145 : vector<16x32xf32>
    %147 = arith.mulf %146, %54 : vector<16x32xf32>
    %148 = arith.negf %8 : vector<16x32xf32>
    %149 = math.exp %148 : vector<16x32xf32>
    %cst_52 = arith.constant 1.000000e+00 : f32
    %150 = vector.broadcast %cst_52 : f32 to vector<16x32xf32>
    %151 = arith.addf %150, %149 : vector<16x32xf32>
    %152 = arith.divf %150, %151 : vector<16x32xf32>
    %153 = arith.mulf %8, %152 : vector<16x32xf32>
    %154 = arith.mulf %147, %153 : vector<16x32xf32>
    %c0_53 = arith.constant 0 : index
    %c0_54 = arith.constant 0 : index
    %155 = vector.load %arg11[%c0_53, %c0_54] : memref<32x128xf32, #tpu.memory_space<vmem>>, vector<32x128xf32>
    %cst_55 = arith.constant dense<0.000000e+00> : vector<16x128xf32>
    %156 = tpu.matmul %154, %155, %cst_55 {dimension_numbers = #tpu.dot_dimension_numbers<[1], [0], [0], [1], [0, 0, 1, 1], [], []>, precision = #tpu.contract_precision<fp32>} : vector<16x32xf32>, vector<32x128xf32>, vector<16x128xf32> -> vector<16x128xf32>
    %c0_56 = arith.constant 0 : index
    %c0_57 = arith.constant 0 : index
    %157 = vector.load %arg12[%c0_56, %c0_57] : memref<1x128xf32, #tpu.memory_space<vmem>>, vector<1x128xf32>
    %158 = vector.broadcast %157 : vector<1x128xf32> to vector<16x128xf32>
    %159 = arith.addf %156, %158 : vector<16x128xf32>
    %c0_58 = arith.constant 0 : index
    %c0_59 = arith.constant 0 : index
    %160 = vector.load %arg13[%c0_58, %c0_59] : memref<16x128xf32, #tpu.memory_space<vmem>>, vector<16x128xf32>
    tpu.vector_store %arg13[%c0_58, %c0_59], %159 {strides = array<i32>} : memref<16x128xf32, #tpu.memory_space<vmem>>, vector<16x128xf32>,
    return
  }
  func.func @transform_0(%arg0: i32) -> (i32, i32) {
    %c0_i32 = arith.constant 0 : i32
    %c0_i32_0 = arith.constant 0 : i32
    return %arg0, %c0_i32 : i32, i32
  }
  func.func @transform_1(%arg0: i32) -> (i32, i32) {
    %c0_i32 = arith.constant 0 : i32
    %c0_i32_0 = arith.constant 0 : i32
    return %arg0, %c0_i32 : i32, i32
  }
  func.func @transform_2(%arg0: i32) -> (i32, i32) {
    %c0_i32 = arith.constant 0 : i32
    %c0_i32_0 = arith.constant 0 : i32
    %c0_i32_1 = arith.constant 0 : i32
    return %c0_i32, %c0_i32_0 : i32, i32
  }
  func.func @transform_3(%arg0: i32) -> (i32, i32) {
    %c0_i32 = arith.constant 0 : i32
    %c0_i32_0 = arith.constant 0 : i32
    %c0_i32_1 = arith.constant 0 : i32
    return %c0_i32, %c0_i32_0 : i32, i32
  }
  func.func @transform_4(%arg0: i32) -> (i32, i32) {
    %c0_i32 = arith.constant 0 : i32
    %c0_i32_0 = arith.constant 0 : i32
    %c0_i32_1 = arith.constant 0 : i32
    return %c0_i32, %c0_i32_0 : i32, i32
  }
  func.func @transform_5(%arg0: i32) -> (i32, i32) {
    %c0_i32 = arith.constant 0 : i32
    %c0_i32_0 = arith.constant 0 : i32
    %c0_i32_1 = arith.constant 0 : i32
    return %c0_i32, %c0_i32_0 : i32, i32
  }
  func.func @transform_6(%arg0: i32) -> (i32, i32) {
    %c0_i32 = arith.constant 0 : i32
    %c0_i32_0 = arith.constant 0 : i32
    %c0_i32_1 = arith.constant 0 : i32
    return %c0_i32, %c0_i32_0 : i32, i32
  }
  func.func @transform_7(%arg0: i32) -> (i32, i32) {
    %c0_i32 = arith.constant 0 : i32
    %c0_i32_0 = arith.constant 0 : i32
    %c0_i32_1 = arith.constant 0 : i32
    return %c0_i32, %c0_i32_0 : i32, i32
  }
  func.func @transform_8(%arg0: i32) -> (i32, i32) {
    %c0_i32 = arith.constant 0 : i32
    %c0_i32_0 = arith.constant 0 : i32
    %c0_i32_1 = arith.constant 0 : i32
    return %c0_i32, %c0_i32_0 : i32, i32
  }
  func.func @transform_9(%arg0: i32) -> (i32, i32) {
    %c0_i32 = arith.constant 0 : i32
    %c0_i32_0 = arith.constant 0 : i32
    %c0_i32_1 = arith.constant 0 : i32
    return %c0_i32, %c0_i32_0 : i32, i32
  }
  func.func @transform_10(%arg0: i32) -> (i32, i32) {
    %c0_i32 = arith.constant 0 : i32
    %c0_i32_0 = arith.constant 0 : i32
    %c0_i32_1 = arith.constant 0 : i32
    return %c0_i32, %c0_i32_0 : i32, i32
  }
  func.func @transform_11(%arg0: i32) -> (i32, i32) {
    %c0_i32 = arith.constant 0 : i32
    %c0_i32_0 = arith.constant 0 : i32
    %c0_i32_1 = arith.constant 0 : i32
    return %c0_i32, %c0_i32_0 : i32, i32
  }
  func.func @transform_12(%arg0: i32) -> (i32, i32) {
    %c0_i32 = arith.constant 0 : i32
    %c0_i32_0 = arith.constant 0 : i32
    return %arg0, %c0_i32 : i32, i32
  }
}

</mosaic_0001>

<bundles_post_ra>
// kernel: tpu_custom_call.1
= control target key start
LH: loop header
LB: loop body
LE: loop exit
PB: predicated region body
PF: predicated region fallthrough
CT: control target
= control target key end

     0   :  { %17 = vsyncpa [#allocation3], 0  ;;  %s3066_s0 = inlined_call_operand.hbm [shape: f32[16,16], index: 0, kind: input, shape index: {}]   ;;  %s3067_s1 = inlined_call_operand.vmem [shape: s32[16,1], index: 1, kind: input, shape index: {}]   ;;  %s3068_s2 = inlined_call_operand.hbm [shape: f32[16,64], index: 2, kind: input, shape index: {}]   ;;  %s3069_s3 = inlined_call_operand.vmem [shape: f32[1,64], index: 3, kind: input, shape index: {}]   ;;  %s3070_s4 = inlined_call_operand.hbm [shape: f32[4,32], index: 4, kind: input, shape index: {}]   ;;  %s3071_s5 = inlined_call_operand.vmem [shape: f32[1,32], index: 5, kind: input, shape index: {}]   ;;  %s3072_s6 = inlined_call_operand.hbm [shape: f32[32,32], index: 6, kind: input, shape index: {}]   ;;  %s3073_s7 = inlined_call_operand.vmem [shape: f32[1,32], index: 7, kind: input, shape index: {}]   ;;  %s3074_s8 = inlined_call_operand.hbm [shape: f32[8,32], index: 8, kind: input, shape index: {}]   ;;  %s3075_s9 = inlined_call_operand.hbm [shape: f32[1,32], index: 9, kind: input, shape index: {}]   ;;  %s3076_s10 = inlined_call_operand.vmem [shape: f32[32,128], index: 10, kind: input, shape index: {}]   ;;  %s3077_s11 = inlined_call_operand.vmem [shape: f32[1,128], index: 11, kind: input, shape index: {}]   ;;  %s3078_s12 = inlined_call_operand.hbm [shape: f32[16,128], index: 12, kind: output, shape index: {}]  }
   0x1   :  { %18 = vsyncpa [#allocation6], 0 }
   0x2   :  { %19 = vsyncpa [#allocation9], 0 }
   0x3   :  { %20 = vsyncpa [#allocation12], 0 }
   0x4   :  { %21 = vsyncpa [#allocation4], 0  ;;  %s2534_s21 = smov [#allocation5]   ;;  %s2535_s23 = smov [#allocation8]  }
   0x5   :  { %s41_s22 = sshll.u32 %s2534_s21, 4  ;;  %s67_s24 = sshll.u32 %s2535_s23, 4  ;;  %s42_s22 = int_to_ptr.vmem [resolvable:$true] %s41_s22  ;;  %s68_s24 = int_to_ptr.vmem [resolvable:$true] %s67_s24 }
   0x6   :  { %s2392_s25 = scalar_lea.vmem %s42_s22, 256  ;;  %p2397_p1 = scmp.lt.s32.totalorder %s42_s22, %s42_s22 }
   0x7   :  { %p2393_p0 = scmp.ne.s32.totalorder %s42_s22, %s2392_s25  ;;  %p2398_p2 = scmp.lt.s32.totalorder %s2392_s25, %s2392_s25 }
   0x9   :  { %p2399_p3 = por %p2398_p2, %p2397_p1 }
   0xb   :  { %p2400_p4 = pnand %p2399_p3, %p2393_p0 }
   0xd   :  { %2403 = shalt.err (!%p2400_p4)
}
   0xe   :  { %s2536_s26 = smov 128   ;;  %s2537_s27 = smov 8  }
   0xf   :  { %47 = dma.hbm_to_vmem [thread:$0]  %s3068_s2, 256, %s42_s22, [#allocation6], %s2536_s26, %s2536_s26, %s2537_s27  }
  0x10   :  { %s2412_s30 = scalar_lea.vmem %s68_s24, 512  ;;  %p2417_p6 = scmp.lt.s32.totalorder %s68_s24, %s68_s24 }
  0x11   :  { %p2413_p5 = scmp.ne.s32.totalorder %s68_s24, %s2412_s30  ;;  %p2418_p7 = scmp.lt.s32.totalorder %s2412_s30, %s2412_s30 }
  0x13   :  { %p2419_p8 = por %p2418_p7, %p2417_p6 }
  0x15   :  { %p2420_p9 = pnand %p2419_p8, %p2413_p5 }
  0x17   :  { %2423 = shalt.err (!%p2420_p9)
}
  0x18   :  { %73 = dma.hbm_to_vmem [thread:$0]  %s3072_s6, 512, %s68_s24, [#allocation9], %s2536_s26, %s2536_s26, %s2537_s27  }
  0x19   :  { %s2538_s15 = smov [#allocation2]   ;;  %s2539_s17 = smov [#allocation7]  }
  0x1a   :  { %s27_s16 = sshll.u32 %s2538_s15, 4  ;;  %s56_s18 = sshll.u32 %s2539_s17, 4  ;;  %s28_s16 = int_to_ptr.vmem [resolvable:$true] %s27_s16  ;;  %s57_s18 = int_to_ptr.vmem [resolvable:$true] %s56_s18 }
  0x1b   :  { %s2432_s2 = scalar_lea.vmem %s28_s16, 256  ;;  %p2437_p11 = scmp.lt.s32.totalorder %s28_s16, %s28_s16 }
  0x1c   :  { %p2433_p10 = scmp.ne.s32.totalorder %s28_s16, %s2432_s2  ;;  %p2438_p12 = scmp.lt.s32.totalorder %s2432_s2, %s2432_s2 }
  0x1e   :  { %p2439_p13 = por %p2438_p12, %p2437_p11 }
  0x20   :  { %p2440_p0 = pnand %p2439_p13, %p2433_p10 }
  0x22   :  { %2443 = shalt.err (!%p2440_p0)
}
  0x23   :  { %33 = dma.hbm_to_vmem [thread:$0]  %s3066_s0, 256, %s28_s16, [#allocation3], %s2536_s26, %s2536_s26, %s2537_s27  }
  0x24   :  { %s2452_s6 = scalar_lea.vmem %s57_s18, 64  ;;  %p2457_p2 = scmp.lt.s32.totalorder %s57_s18, %s57_s18 }
  0x25   :  { %p2453_p1 = scmp.ne.s32.totalorder %s57_s18, %s2452_s6  ;;  %p2458_p3 = scmp.lt.s32.totalorder %s2452_s6, %s2452_s6 }
  0x27   :  { %p2459_p4 = por %p2458_p3, %p2457_p2 }
  0x29   :  { %p2460_p5 = pnand %p2459_p4, %p2453_p1 }
  0x2b   :  { %2463 = shalt.err (!%p2460_p5)
}
  0x2c   :  { %59 = dma.hbm_to_vmem [thread:$0]  %s3070_s4, 64, %s57_s18, [#allocation6]  }
  0x2d   :  { %s2540_s23 = smov [#allocation10]   ;;  %s2541_s25 = smov [#allocation11]  }
  0x2e   :  { %s82_s24 = sshll.u32 %s2540_s23, 4  ;;  %s92_s28 = sshll.u32 %s2541_s25, 4  ;;  %s83_s24 = int_to_ptr.vmem [resolvable:$true] %s82_s24  ;;  %s93_s28 = int_to_ptr.vmem [resolvable:$true] %s92_s28 }
  0x2f   :  { %s2472_s29 = scalar_lea.vmem %s83_s24, 128  ;;  %p2477_p7 = scmp.lt.s32.totalorder %s83_s24, %s83_s24 }
  0x30   :  { %p2473_p6 = scmp.ne.s32.totalorder %s83_s24, %s2472_s29  ;;  %p2478_p8 = scmp.lt.s32.totalorder %s2472_s29, %s2472_s29 }
  0x32   :  { %p2479_p9 = por %p2478_p8, %p2477_p7 }
  0x34   :  { %p2480_p10 = pnand %p2479_p9, %p2473_p6 }
  0x36   :  { %2483 = shalt.err (!%p2480_p10)
}
  0x37   :  { %85 = dma.hbm_to_vmem [thread:$0]  %s3074_s8, 128, %s83_s24, [#allocation9]  }
  0x38   :  { %s2492_s13 = scalar_lea.vmem %s93_s28, 16  ;;  %s2496_s4 = scalar_lea.vmem %s93_s28, 32 }
  0x39   :  { %p2493_p11 = scmp.ne.s32.totalorder %s93_s28, %s2492_s13  ;;  %p2497_p12 = scmp.lt.s32.totalorder %s93_s28, %s93_s28 }
  0x3a   :  { %p2498_p13 = scmp.lt.s32.totalorder %s2496_s4, %s2492_s13 }
  0x3c   :  { %p2499_p0 = por %p2498_p13, %p2497_p12 }
  0x3e   :  { %p2500_p1 = pnand %p2499_p0, %p2493_p11 }
  0x40   :  { %2503 = shalt.err (!%p2500_p1)
}
  0x41   :  { %95 = dma.hbm_to_vmem [thread:$0]  %s3075_s9, 16, %s93_s28, [#allocation12]  }
  0x42   :  { %2524 = dma.done.wait [#allocation3], 256  }
  0x43   :  { %2525 = vsyncadd [#allocation3], 4294967040 }
  0x44   :  { %2526 = dma.done.wait [#allocation6], 320  }
  0x45   :  { %2527 = vsyncadd [#allocation6], 4294966976 }
  0x46   :  { %2528 = dma.done.wait [#allocation9], 640  }
  0x47   :  { %2529 = vsyncadd [#allocation9], 4294966656 }
  0x48   :  { %2530 = dma.done.wait [#allocation12], 16  }
  0x49   :  { %2531 = vsyncadd [#allocation12], 4294967280  ;;  %v2542_v0 = vmov 0   ;;  %vm131_vm0 = vcmask 130048   ;;  %v123_v1 = vld [vmem:[#allocation5 + $0x8] sm:$0xff]  ;;  %v122_v2 = vld [vmem:[#allocation5] sm:$0xff]  ;;  %v641_v62 = vlaneseq }
  0x4a   :  { %2366 = vset.pattern.permute.xlu0 %v2542_v0  ;;  %2367 = vset.pattern.permute.xlu1 %v2542_v0  ;;  %v118_v3 = vld [vmem:[#allocation2] sm:$0xff]  ;;  %v2639_v4 = vand.u32 4294901760, %v123_v1  ;;  %v2641_v5 = vand.u32 4294901760, %v122_v2  ;;  %v119_v6 = vld [vmem:[#allocation2 + $0x8] sm:$0xff]  ;;  %v755_v37 = vld [vmem:[#allocation8 + $0x10] sm:$0xff]  ;;  %s2543_s6 = smov 96  }
  0x4b   :  { %v133_v7 = vsel %vm131_vm0, %v118_v3, 0  ;;  %v2646_v8 = vld [vmem:[%s3067_s1] sm:$0xff]  ;;  %v2651_v9 = vld [vmem:[%s3067_s1 + $0x8] sm:$0xff]  ;;  %v136_v10 = vsel %vm131_vm0, %v119_v6, 0  ;;  %v2708_v39 = vand.u32 4294901760, %v755_v37  ;;  %vm764_vm0 = vcmask 261120  }
  0x4c   :  { %v2653_v11 = vand.u32 4294901760, %v133_v7  ;;  %vm663_vm1 = vcmp.ge.s32.totalorder %v2646_v8, 3  ;;  %vm690_vm2 = vcmp.ge.s32.totalorder %v2646_v8, 2  ;;  %2181 = vmatprep.subr.mxu0 %v2639_v4  ;;  %v255_v12 = vsub.f32 %v123_v1, %v2639_v4  ;;  %v756_v35 = vld [vmem:[#allocation8 + $0x18] sm:$0xff]  ;;  %v754_v40 = vld [vmem:[#allocation8 + $0x8] sm:$0xff]  ;;  %v753_v44 = vld [vmem:[#allocation8] sm:$0xff] }
  0x4d   :  { %v2659_v13 = vand.u32 4294901760, %v136_v10  ;;  %v262_v14 = vsub.f32 %v122_v2, %v2641_v5  ;;  %v665_v15 = vsel %vm663_vm1, 1, %v2542_v0  ;;  %2182 = vmatpush3.msra.mxu0 %v2639_v4  ;;  %v692_v17 = vsel %vm690_vm2, 1, %v2542_v0  ;;  %v2076_v59 = vld [vmem:[%s3069_s3] ss:$0 sm:$0xff] }
  0x4e   :  { %v206_v16 = vsub.f32 %v133_v7, %v2653_v11  ;;  %2192 = vmatprep.mubr.f32.mxu1 %v2653_v11  ;;  %vm664_vm3 = vcmp.ge.s32.totalorder %v2651_v9, 3  ;;  %vm691_vm4 = vcmp.ge.s32.totalorder %v2651_v9, 2  ;;  %2183 = vmatprep.subr.mxu0 %v2641_v5  ;;  %v256_v18 = vand.u32 4294901760, %v255_v12 }
  0x4f   :  { %v216_v19 = vsub.f32 %v136_v10, %v2659_v13  ;;  %v263_v20 = vand.u32 4294901760, %v262_v14  ;;  %668 = vperm.xlu0 %2366, %v665_v15   ;;  %2184 = vmatpush3.msra.mxu0 %v2641_v5  ;;  %v666_v22 = vsel %vm664_vm3, 1, %v2542_v0  ;;  %v693_v26 = vsel %vm691_vm4, 1, %v2542_v0 }
  0x50   :  { %v207_v21 = vand.u32 4294901760, %v206_v16  ;;  %695 = vperm.xlu1 %2367, %v692_v17   ;;  %v257_v23 = vsub.f32 %v255_v12, %v256_v18  ;;  %2195 = vmatprep.subr.mxu0 %v255_v12  ;;  %vm717_vm5 = vcmp.ge.s32.totalorder %v2646_v8, 1  ;;  %vm718_vm6 = vcmp.ge.s32.totalorder %v2651_v9, 1 }
  0x51   :  { %v217_v24 = vand.u32 4294901760, %v216_v19  ;;  %v264_v25 = vsub.f32 %v262_v14, %v263_v20  ;;  %v719_v33 = vsel %vm717_vm5, 1, %v2542_v0  ;;  %v720_v34 = vsel %vm718_vm6, 1, %v2542_v0 }
  0x52   :  { %v208_v27 = vsub.f32 %v206_v16, %v207_v21  ;;  %v258_v28 = vand.u32 4294901760, %v257_v23  ;;  %v2703_v36 = vand.u32 4294901760, %v756_v35  ;;  %v2716_v42 = vsub.f32 %v755_v37, %v2708_v39 }
  0x53   :  { %v218_v29 = vsub.f32 %v216_v19, %v217_v24  ;;  %v265_v30 = vand.u32 4294901760, %v264_v25  ;;  %671 = vperm.xlu0 %2366, %v666_v22   ;;  %v2718_v43 = vand.u32 4294901760, %v754_v40  ;;  %v2730_v48 = vand.u32 4294901760, %v753_v44 }
  0x54   :  { %v209_v31 = vand.u32 4294901760, %v208_v27  ;;  %698 = vperm.xlu1 %2367, %v693_v26   ;;  %2188 = vmatprep.subr.mxu1 %v258_v28  ;;  %v2706_v38 = vsub.f32 %v756_v35, %v2703_v36  ;;  %v2725_v46 = vand.u32 4294901760, %v2716_v42  ;;  %v2756_v10 = vshrl.u32 %v641_v62, 7 }
  0x55   :  { %v219_v32 = vand.u32 4294901760, %v218_v29  ;;  %2189 = vmatpush3.msra.mxu1 %v258_v28  ;;  %v2728_v47 = vsub.f32 %v754_v40, %v2718_v43  ;;  %v2740_v52 = vsub.f32 %v753_v44, %v2730_v48  ;;  %v2077_v44 = vld [vmem:[%s3071_s5] ss:$0 sm:$0xff] }
  0x56   :  { %2185 = vmatprep.mubr.f32.mxu0 %v209_v31  ;;  %2190 = vmatprep.subr.mxu1 %v265_v30  ;;  %v2713_v41 = vand.u32 4294901760, %v2706_v38  ;;  %v895_v50 = vsub.f32 %v2716_v42, %v2725_v46  ;;  %v643_v17 = vsub.s32 3, %v2756_v10  ;;  %v679_v23 = vsub.s32 0, %v2756_v10 }
  0x57   :  { %2186 = vmatmul.mubr.f32.vlgmr.msra.gmra.mxu0 %v219_v32  ;;  %2191 = vmatpush3.msra.mxu1 %v265_v30  ;;  %v2737_v51 = vand.u32 4294901760, %v2728_v47  ;;  %v2747_v55 = vand.u32 4294901760, %v2740_v52  ;;  %v706_v25 = vsub.s32 1, %v2756_v10  ;;  %v733_v26 = vsub.s32 2, %v2756_v10 }
  0x58   :  { %2196 = vmatpush3.msra.mxu0 %v255_v12  ;;  %2193 = vmatmul.mubr.f32.vlgmr.msra.gmra.mxu1 %v2659_v13  ;;  %v888_v45 = vsub.f32 %v2706_v38, %v2713_v41  ;;  %v896_v53 = vand.u32 4294901760, %v895_v50  ;;  %vm660_vm7 = vcmp.lt.s32.totalorder %v2756_v10, 3  ;;  %vm687_vm8 = vcmp.lt.s32.totalorder %v2756_v10, 2 }
  0x59   :  { %2197 = vmatprep.subr.mxu0 %v262_v14  ;;  %2202 = vmatprep.subr.mxu1 %v2639_v4  ;;  %v902_v54 = vsub.f32 %v2728_v47, %v2737_v51  ;;  %v909_v57 = vsub.f32 %v2740_v52, %v2747_v55  ;;  %vm714_vm9 = vcmp.lt.s32.totalorder %v2756_v10, 1 }
  0x5a   :  { %2198 = vmatpush3.msra.mxu0 %v262_v14  ;;  %2199 = vmatprep.mubr.f32.mxu0 %v206_v16  ;;  %v889_v49 = vand.u32 4294901760, %v888_v45 }
  0x5b   :  { %2203 = vmatpush3.msra.mxu1 %v2639_v4  ;;  %2200 = vmatmul.mubr.f32.vlgmr.msra.gmra.mxu0 %v216_v19  ;;  %v903_v56 = vand.u32 4294901760, %v902_v54  ;;  %v910_v58 = vand.u32 4294901760, %v909_v57  ;;  %v640_v19 = vld [vmem:[#allocation7] sm:$0xf] }
  0x5c   :  { %2204 = vmatprep.subr.mxu1 %v2641_v5  ;;  %2209 = vmatprep.subr.mxu0 %v256_v18  ;;  %v644_v29 = vrot.slane %v640_v19, %v643_v17  ;;  %v707_v37 = vrot.slane %v640_v19, %v706_v25  ;;  %v734_v40 = vrot.slane %v640_v19, %v733_v26 }
  0x5d   :  { %2205 = vmatpush3.msra.mxu1 %v2641_v5  ;;  %2206 = vmatprep.mubr.f32.mxu1 %v207_v21 }
  0x5e   :  { %2210 = vmatpush3.msra.mxu0 %v256_v18  ;;  %2207 = vmatmul.mubr.f32.vlgmr.msra.gmra.mxu1 %v217_v24 }
  0x5f   :  { %2211 = vmatprep.subr.mxu0 %v263_v20  ;;  %2216 = vmatprep.subr.mxu1 %v2639_v4 }
  0x60   :  { %2212 = vmatpush3.msra.mxu0 %v263_v20  ;;  %2213 = vmatprep.mubr.f32.mxu0 %v2653_v11 }
  0x61   :  { %2217 = vmatpush3.msra.mxu1 %v2639_v4  ;;  %2214 = vmatmul.mubr.f32.vlgmr.msra.gmra.mxu0 %v2659_v13 }
  0x62   :  { %2218 = vmatprep.subr.mxu1 %v2641_v5  ;;  %2220 = vmatprep.mubr.f32.mxu1 %v2653_v11 }
  0x63   :  { %2219 = vmatpush3.msra.mxu1 %v2641_v5  ;;  %722 = vperm.xlu0 %2366, %v719_v33   ;;  %v680_v33 = vrot.slane %v640_v19, %v679_v23 }
  0x64   :  { %2221 = vmatmul.mubr.f32.vlgmr.msra.gmra.mxu1 %v2659_v13  ;;  %725 = vperm.xlu1 %2367, %v720_v34  }
  0x65   :  { %2223 = vmatprep.subr.mxu0 %v2703_v36  ;;  %2234 = vmatprep.subr.mxu1 %v889_v49 }
  0x66   :  { %2224 = vmatpush3.msra.mxu0 %v2703_v36  ;;  %2235 = vmatpush3.msra.mxu1 %v889_v49 }
  0x67   :  { %2225 = vmatprep.subr.mxu0 %v2708_v39  ;;  %2236 = vmatprep.subr.mxu1 %v896_v53 }
  0x68   :  { %2226 = vmatpush3.msra.mxu0 %v2708_v39  ;;  %2237 = vmatpush3.msra.mxu1 %v896_v53 }
  0x69   :  { %2227 = vmatprep.subr.mxu0 %v2718_v43  ;;  %2238 = vmatprep.subr.mxu1 %v903_v56 }
  0x6a   :  { %2228 = vmatpush3.msra.mxu0 %v2718_v43  ;;  %2239 = vmatpush3.msra.mxu1 %v903_v56 }
  0x6b   :  { %2229 = vmatprep.subr.mxu0 %v2730_v48  ;;  %2240 = vmatprep.subr.mxu1 %v910_v58 }
  0x6c   :  { %2230 = vmatpush3.msra.mxu0 %v2730_v48  ;;  %2241 = vmatpush3.msra.mxu1 %v910_v58 }
  0x6d   :  { %2245 = vmatprep.subr.mxu0 %v2706_v38  ;;  %2256 = vmatprep.subr.mxu1 %v2703_v36 }
  0xca   :  { %v669_v3 = vpop.permute.xlu0 %668 }
  0xcb   :  { %v696_v7 = vpop.permute.xlu1 %695  ;;  %vm673_vm10 = vcmp.eq.s32.totalorder %v669_v3, 1 }
  0xcc   :  { %vm700_vm11 = vcmp.eq.s32.totalorder %v696_v7, 1 }
  0xce   :  { %v672_v16 = vpop.permute.xlu0 %671 }
  0xcf   :  { %v699_v22 = vpop.permute.xlu1 %698  ;;  %vm674_vm12 = vcmp.eq.s32.totalorder %v672_v16, 1 }
  0xd0   :  { %vm701_vm13 = vcmp.eq.s32.totalorder %v699_v22, 1 }
  0xde   :  { %v723_v34 = vpop.permute.xlu0 %722 }
  0xdf   :  { %v726_v45 = vpop.permute.xlu1 %725  ;;  %vm727_vm14 = vcmp.eq.s32.totalorder %v723_v34, 1 }
  0xe0   :  { %vm728_vm15 = vcmp.eq.s32.totalorder %v726_v45, 1 }
 0x117   :  { %v2187_v60 = vpop.f32.mrf.mxu0 }
 0x118   :  { %v222_v61 = vadd.f32 %v2187_v60, %v2076_v59  ;;  %v2194_v0 = vpop.f32.mrf.mxu1 }
 0x119   :  { %v211_v63 = vpop.f32.mrf.mxu0 }
 0x11a   :  { %v212_v1 = vadd.f32 %v2076_v59, %v211_v63  ;;  %v309_v2 = vadd.f32 %v2194_v0, %v222_v61  ;;  %v302_v4 = vpop.f32.mrf.mxu1 }
 0x11b   :  { %v2201_v6 = vpop.f32.mrf.mxu0 }
 0x11c   :  { %v303_v5 = vadd.f32 %v302_v4, %v212_v1  ;;  %v392_v11 = vadd.f32 %v2201_v6, %v309_v2 }
 0x11d   :  { %v384_v12 = vpop.f32.mrf.mxu0 }
 0x11e   :  { %v385_v13 = vadd.f32 %v384_v12, %v303_v5  ;;  %v2208_v14 = vpop.f32.mrf.mxu1 }
 0x11f   :  { %v475_v15 = vadd.f32 %v2208_v14, %v392_v11 }
 0x120   :  { %v466_v18 = vpop.f32.mrf.mxu1 }
 0x121   :  { %v467_v20 = vadd.f32 %v466_v18, %v385_v13  ;;  %v2215_v21 = vpop.f32.mrf.mxu0 }
 0x122   :  { %v558_v24 = vadd.f32 %v2215_v21, %v475_v15 }
 0x123   :  { %v551_v27 = vpop.f32.mrf.mxu0 }
 0x124   :  { %v2222_v28 = vpop.f32.mrf.mxu1  ;;  %v552_v30 = vadd.f32 %v551_v27, %v467_v20 }
 0x125   :  { %v2764_v31 = vadd.f32 %v2222_v28, %v558_v24 }
 0x126   :  { %v630_v32 = vpop.f32.mrf.mxu1 }
 0x127   :  { %v2771_v35 = vadd.f32 %v630_v32, %v552_v30  ;;  %v646_v49 = vmul.f32 %v644_v29, %v2764_v31  ;;  %v657_v54 = vrot.slane %v2764_v31, 5  ;;  %v686_v57 = vrot.slane %v2764_v31, 6 }
 0x128   :  { %v713_v59 = vrot.slane %v2764_v31, 7 }
 0x129   :  { %v645_v50 = vmul.f32 %v644_v29, %v2771_v35  ;;  %v656_v53 = vrot.slane %v2771_v35, 5  ;;  %v685_v56 = vrot.slane %v2771_v35, 6  ;;  %v712_v58 = vrot.slane %v2771_v35, 7 }
 0x12a   :  { %v655_v61 = vadd.f32 %v2077_v44, %v646_v49 }
 0x12b   :  { %v662_v60 = vsel %vm660_vm7, %v657_v54, %v656_v53  ;;  %v661_v62 = vsel %vm660_vm7, %v656_v53, %v657_v54  ;;  %v689_v0 = vsel %vm687_vm8, %v686_v57, %v685_v56  ;;  %v716_v1 = vsel %vm714_vm9, %v713_v59, %v712_v58 }
 0x12c   :  { %v675_v63 = vsel %vm673_vm10, %v662_v60, 0.0  ;;  %v676_v2 = vsel %vm674_vm12, %v661_v62, 0.0  ;;  %v654_v4 = vadd.f32 %v2077_v44, %v645_v50  ;;  %v702_v6 = vsel %vm700_vm11, %v689_v0, 0.0 }
 0x12d   :  { %v681_v5 = vmul.f32 %v680_v33, %v675_v63  ;;  %v682_v11 = vmul.f32 %v680_v33, %v676_v2  ;;  %v708_v12 = vmul.f32 %v707_v37, %v702_v6  ;;  %v729_v13 = vsel %vm727_vm14, %v716_v1, 0.0 }
 0x12e   :  { %v688_v3 = vsel %vm687_vm8, %v685_v56, %v686_v57  ;;  %v715_v14 = vsel %vm714_vm9, %v712_v58, %v713_v59  ;;  %v735_v7 = vmul.f32 %v734_v40, %v729_v13  ;;  %vm1374_vm10 = vcmp.lt.s32.totalorder %v2756_v10, 4 }
 0x12f   :  { %v683_v15 = vadd.f32 %v681_v5, %v654_v4  ;;  %v684_v18 = vadd.f32 %v682_v11, %v655_v61  ;;  %v703_v19 = vsel %vm701_vm13, %v688_v3, 0.0  ;;  %v730_v16 = vsel %vm728_vm15, %v715_v14, 0.0 }
 0x130   :  { %v709_v20 = vmul.f32 %v707_v37, %v703_v19  ;;  %v736_v27 = vmul.f32 %v734_v40, %v730_v16  ;;  %vm1389_vm11 = vcmp.ge.s32.totalorder %v2646_v8, 4  ;;  %vm1413_vm12 = vcmp.ge.s32.totalorder %v2651_v9, 5 }
 0x131   :  { %v710_v21 = vadd.f32 %v708_v12, %v683_v15 }
 0x132   :  { %v711_v24 = vadd.f32 %v709_v20, %v684_v18 }
 0x133   :  { %v737_v28 = vadd.f32 %v735_v7, %v710_v21 }
 0x134   :  { %v738_v29 = vadd.f32 %v736_v27, %v711_v24 }
 0x135   :  { %v2078_v30 = vmul.f32 -1.442695, %v737_v28 }
 0x136   :  { %v2079_v32 = vmul.f32 -1.442695, %v738_v29 }
 0x137   :  { %2368 = vpow2.f32 %v2078_v30 }
 0x138   :  { %2370 = vpow2.f32 %v2079_v32 }
 0x144   :  { %v2369_v33 = vpop.eup %2368 }
 0x145   :  { %v2371_v34 = vpop.eup %2370  ;;  %v745_v44 = vadd.f32 1.0, %v2369_v33 }
 0x146   :  { %v746_v49 = vadd.f32 1.0, %v2371_v34 }
 0x147   :  { %2372 = vrcp.f32 %v745_v44  ;;  %v1379_v44 = vsub.s32 4, %v2756_v10 }
 0x148   :  { %2374 = vrcp.f32 %v746_v49 }
 0x154   :  { %v2373_v22 = vpop.eup %2372 }
 0x155   :  { %v2375_v45 = vpop.eup %2374  ;;  %v2806_v37 = vmul.f32 %v2373_v22, %v737_v28 }
 0x156   :  { %v2808_v50 = vmul.f32 %v2375_v45, %v738_v29 }
 0x157   :  { %v766_v40 = vsel %vm764_vm0, %v2806_v37, 0 }
 0x158   :  { %v840_v53 = vand.u32 4294901760, %v766_v40  ;;  %v769_v54 = vsel %vm764_vm0, %v2808_v50, 0 }
 0x159   :  { %v850_v56 = vand.u32 4294901760, %v769_v54 }
 0x15a   :  { %2242 = vmatprep.mubr.f32.mxu1 %v840_v53  ;;  %v841_v57 = vsub.f32 %v766_v40, %v840_v53 }
 0x15b   :  { %v851_v58 = vsub.f32 %v769_v54, %v850_v56  ;;  %2243 = vmatmul.mubr.f32.vlgmr.msra.gmra.mxu1 %v850_v56 }
 0x15c   :  { %2257 = vmatpush3.msra.mxu1 %v2703_v36  ;;  %v842_v59 = vand.u32 4294901760, %v841_v57 }
 0x15d   :  { %2258 = vmatprep.subr.mxu1 %v2708_v39  ;;  %v852_v60 = vand.u32 4294901760, %v851_v58 }
 0x15e   :  { %2259 = vmatpush3.msra.mxu1 %v2708_v39  ;;  %2264 = vmatprep.mubr.f32.mxu1 %v842_v59  ;;  %v843_v61 = vsub.f32 %v841_v57, %v842_v59 }
 0x15f   :  { %2260 = vmatprep.subr.mxu1 %v2718_v43  ;;  %v853_v62 = vsub.f32 %v851_v58, %v852_v60 }
 0x160   :  { %2261 = vmatpush3.msra.mxu1 %v2718_v43  ;;  %v844_v63 = vand.u32 4294901760, %v843_v61 }
 0x161   :  { %2262 = vmatprep.subr.mxu1 %v2730_v48  ;;  %v854_v0 = vand.u32 4294901760, %v853_v62 }
 0x162   :  { %2263 = vmatpush3.msra.mxu1 %v2730_v48  ;;  %2231 = vmatprep.mubr.f32.mxu0 %v844_v63  ;;  %v1402_v63 = vsub.s32 5, %v2756_v10 }
 0x163   :  { %2265 = vmatmul.mubr.f32.vlgmr.msra.gmra.mxu1 %v852_v60  ;;  %2278 = vmatprep.subr.mxu1 %v2703_v36 }
 0x164   :  { %2232 = vmatmul.mubr.f32.vlgmr.msra.gmra.mxu0 %v854_v0  ;;  %2279 = vmatpush3.msra.mxu1 %v2703_v36 }
 0x165   :  { %2246 = vmatpush3.msra.mxu0 %v2706_v38  ;;  %2286 = vmatprep.mubr.f32.mxu1 %v840_v53  ;;  %v2080_v38 = vld [vmem:[%s3073_s7] ss:$0 sm:$0xff] }
 0x166   :  { %2247 = vmatprep.subr.mxu0 %v2716_v42  ;;  %2253 = vmatprep.mubr.f32.mxu0 %v841_v57 }
 0x167   :  { %2280 = vmatprep.subr.mxu1 %v2708_v39  ;;  %2248 = vmatpush3.msra.mxu0 %v2716_v42 }
 0x168   :  { %2281 = vmatpush3.msra.mxu1 %v2708_v39  ;;  %2249 = vmatprep.subr.mxu0 %v2728_v47 }
 0x169   :  { %2282 = vmatprep.subr.mxu1 %v2718_v43  ;;  %2250 = vmatpush3.msra.mxu0 %v2728_v47 }
 0x16a   :  { %2283 = vmatpush3.msra.mxu1 %v2718_v43  ;;  %2251 = vmatprep.subr.mxu0 %v2740_v52 }
 0x16b   :  { %2284 = vmatprep.subr.mxu1 %v2730_v48  ;;  %2252 = vmatpush3.msra.mxu0 %v2740_v52 }
 0x16c   :  { %2285 = vmatpush3.msra.mxu1 %v2730_v48  ;;  %2254 = vmatmul.mubr.f32.vlgmr.msra.gmra.mxu0 %v851_v58 }
 0x16d   :  { %2267 = vmatprep.subr.mxu0 %v2713_v41  ;;  %2287 = vmatmul.mubr.f32.vlgmr.msra.gmra.mxu1 %v850_v56 }
 0x16e   :  { %2268 = vmatpush3.msra.mxu0 %v2713_v41  ;;  %2275 = vmatprep.mubr.f32.mxu0 %v840_v53 }
 0x16f   :  { %2269 = vmatprep.subr.mxu0 %v2725_v46 }
 0x170   :  { %2270 = vmatpush3.msra.mxu0 %v2725_v46 }
 0x171   :  { %2271 = vmatprep.subr.mxu0 %v2737_v51 }
 0x172   :  { %2272 = vmatpush3.msra.mxu0 %v2737_v51 }
 0x173   :  { %2273 = vmatprep.subr.mxu0 %v2747_v55 }
 0x174   :  { %2274 = vmatpush3.msra.mxu0 %v2747_v55  ;;  %v2847_v55 = vld [vmem:[#allocation10] sm:$0xff] }
 0x175   :  { %2276 = vmatmul.mubr.f32.vlgmr.msra.gmra.mxu0 %v850_v56  ;;  %v1303_v14 = vrot.slane %v2847_v55, %v679_v23  ;;  %v1319_v24 = vrot.slane %v2847_v55, %v706_v25  ;;  %v1339_v23 = vrot.slane %v2847_v55, %v733_v26  ;;  %v1359_v25 = vrot.slane %v2847_v55, %v643_v17 }
 0x176   :  { %v1380_v62 = vrot.slane %v2847_v55, %v1379_v44 }
 0x21b   :  { %v2244_v39 = vpop.f32.mrf.mxu1 }
 0x21d   :  { %v947_v46 = vpop.f32.mrf.mxu1 }
 0x223   :  { %v2266_v52 = vpop.f32.mrf.mxu1 }
 0x224   :  { %v2233_v36 = vpop.f32.mrf.mxu0 }
 0x225   :  { %v857_v42 = vadd.f32 %v2233_v36, %v2080_v38  ;;  %v1117_v5 = vpop.f32.mrf.mxu1 }
 0x226   :  { %v846_v41 = vpop.f32.mrf.mxu0 }
 0x227   :  { %v847_v43 = vadd.f32 %v2080_v38, %v846_v41  ;;  %v954_v48 = vadd.f32 %v2244_v39, %v857_v42  ;;  %v1425_v42 = vsub.s32 6, %v2756_v10 }
 0x229   :  { %v948_v2 = vadd.f32 %v947_v46, %v847_v43 }
 0x22c   :  { %v2255_v47 = vpop.f32.mrf.mxu0 }
 0x22d   :  { %v1041_v51 = vadd.f32 %v2255_v47, %v954_v48  ;;  %v2288_v11 = vpop.f32.mrf.mxu1  ;;  %v1403_v48 = vrot.slane %v2847_v55, %v1402_v63 }
 0x22e   :  { %v1033_v1 = vpop.f32.mrf.mxu0 }
 0x22f   :  { %v1034_v4 = vadd.f32 %v1033_v1, %v948_v2  ;;  %v1126_v6 = vadd.f32 %v2266_v52, %v1041_v51  ;;  %v1289_v16 = vpop.f32.mrf.mxu1 }
 0x231   :  { %v1118_v3 = vadd.f32 %v1117_v5, %v1034_v4  ;;  %v1426_v5 = vrot.slane %v2847_v55, %v1425_v42 }
 0x235   :  { %v2277_v12 = vpop.f32.mrf.mxu0 }
 0x236   :  { %v1215_v13 = vadd.f32 %v2277_v12, %v1126_v6 }
 0x237   :  { %v1208_v15 = vpop.f32.mrf.mxu0 }
 0x238   :  { %v2852_v18 = vadd.f32 %v2288_v11, %v1215_v13  ;;  %v1209_v19 = vadd.f32 %v1208_v15, %v1118_v3  ;;  %v1448_v13 = vsub.s32 7, %v2756_v10 }
 0x23a   :  { %v2854_v20 = vadd.f32 %v1289_v16, %v1209_v19  ;;  %v1305_v21 = vmul.f32 %v1303_v14, %v2852_v18  ;;  %v1313_v7 = vrot.slane %v2852_v18, 7  ;;  %v1333_v27 = vrot.slane %v2852_v18, 6 }
 0x23b   :  { %v1353_v34 = vrot.slane %v2852_v18, 5  ;;  %v1373_v59 = vrot.slane %v2852_v18, 4  ;;  %v1396_v41 = vrot.slane %v2852_v18, 3  ;;  %v1419_v4 = vrot.slane %v2852_v18, 2 }
 0x23c   :  { %v1309_v28 = vsel %vm764_vm0, %v1305_v21, 0.0  ;;  %v1304_v29 = vmul.f32 %v1303_v14, %v2854_v20  ;;  %v1312_v30 = vrot.slane %v2854_v20, 7  ;;  %v1332_v32 = vrot.slane %v2854_v20, 6 }
 0x23d   :  { %1310 = vadd.xlane.f32.xlu0 %v1309_v28  ;;  %v1352_v33 = vrot.slane %v2854_v20, 5  ;;  %v1372_v17 = vrot.slane %v2854_v20, 4  ;;  %v1395_v36 = vrot.slane %v2854_v20, 3  ;;  %v1418_v1 = vrot.slane %v2854_v20, 2 }
 0x23e   :  { %v1306_v26 = vsel %vm764_vm0, %v1304_v29, 0.0  ;;  %v1315_v49 = vsel %vm714_vm9, %v1313_v7, %v1312_v30  ;;  %v1335_v22 = vsel %vm687_vm8, %v1333_v27, %v1332_v32  ;;  %v1314_v45 = vsel %vm714_vm9, %v1312_v30, %v1313_v7 }
 0x23f   :  { %1307 = vadd.xlane.f32.xlu1 %v1306_v26  ;;  %v1320_v40 = vmul.f32 %v1319_v24, %v1315_v49  ;;  %v1340_v53 = vmul.f32 %v1339_v23, %v1335_v22  ;;  %v1355_v54 = vsel %vm660_vm7, %v1353_v34, %v1352_v33  ;;  %v1321_v58 = vmul.f32 %v1319_v24, %v1314_v45 }
 0x240   :  { %v1360_v60 = vmul.f32 %v1359_v25, %v1355_v54  ;;  %v1334_v61 = vsel %vm687_vm8, %v1332_v32, %v1333_v27  ;;  %v1376_v0 = vsel %vm1374_vm10, %v1373_v59, %v1372_v17  ;;  %vm1397_vm9 = vcmp.lt.s32.totalorder %v2756_v10, 5 }
 0x241   :  { %v1322_v56 = vsel %vm764_vm0, %v1320_v40, 0.0  ;;  %v1342_v57 = vsel %vm764_vm0, %v1340_v53, 0.0  ;;  %v1325_v38 = vsel %vm764_vm0, %v1321_v58, 0.0  ;;  %v1341_v39 = vmul.f32 %v1339_v23, %v1334_v61 }
 0x242   :  { %1323 = vadd.xlane.f32.xlu0 %v1322_v56  ;;  %v1362_v43 = vsel %vm764_vm0, %v1360_v60, 0.0  ;;  %v1381_v47 = vmul.f32 %v1380_v62, %v1376_v0  ;;  %v1354_v46 = vsel %vm660_vm7, %v1352_v33, %v1353_v34  ;;  %v1399_v52 = vsel %vm1397_vm9, %v1396_v41, %v1395_v36 }
 0x243   :  { %1343 = vadd.xlane.f32.xlu1 %v1342_v57  ;;  %vm1420_vm8 = vcmp.lt.s32.totalorder %v2756_v10, 6  ;;  %v1345_v51 = vsel %vm764_vm0, %v1341_v39, 0.0  ;;  %v1361_v2 = vmul.f32 %v1359_v25, %v1354_v46  ;;  %v1404_v11 = vmul.f32 %v1403_v48, %v1399_v52 }
 0x244   :  { %v1383_v6 = vsel %vm764_vm0, %v1381_v47, 0.0  ;;  %v1375_v12 = vsel %vm1374_vm10, %v1372_v17, %v1373_v59  ;;  %v1422_v3 = vsel %vm1420_vm8, %v1419_v4, %v1418_v1  ;;  %v1441_v14 = vrot.slane %v2854_v20, 1 }
 0x245   :  { %vm1443_vm7 = vcmp.lt.s32.totalorder %v2756_v10, 7  ;;  %v1365_v15 = vsel %vm764_vm0, %v1361_v2, 0.0  ;;  %v1382_v19 = vmul.f32 %v1380_v62, %v1375_v12  ;;  %v1442_v16 = vrot.slane %v2852_v18, 1 }
 0x246   :  { %1326 = vadd.xlane.f32.xlu0 %v1325_v38  ;;  %v1406_v21 = vsel %vm764_vm0, %v1404_v11, 0.0  ;;  %v1427_v7 = vmul.f32 %v1426_v5, %v1422_v3  ;;  %v1398_v24 = vsel %vm1397_vm9, %v1395_v36, %v1396_v41  ;;  %v1449_v27 = vrot.slane %v2847_v55, %v1448_v13 }
 0x247   :  { %1363 = vadd.xlane.f32.xlu1 %v1362_v43  ;;  %v1445_v20 = vsel %vm1443_vm7, %v1442_v16, %v1441_v14  ;;  %v1386_v23 = vsel %vm764_vm0, %v1382_v19, 0.0  ;;  %v1405_v28 = vmul.f32 %v1403_v48, %v1398_v24  ;;  %v1421_v30 = vsel %vm1420_vm8, %v1418_v1, %v1419_v4 }
 0x248   :  { %v1429_v29 = vsel %vm764_vm0, %v1427_v7, 0.0  ;;  %v1450_v18 = vmul.f32 %v1449_v27, %v1445_v20  ;;  %v1428_v33 = vmul.f32 %v1426_v5, %v1421_v30  ;;  %v1444_v34 = vsel %vm1443_vm7, %v1441_v14, %v1442_v16  ;;  %v1512_v30 = vld [vmem:[%s3076_s10 + $0x18] sm:$0xff] }
 0x249   :  { %v1409_v32 = vsel %vm764_vm0, %v1405_v28, 0.0  ;;  %v1451_v44 = vmul.f32 %v1449_v27, %v1444_v34  ;;  %v2082_v49 = vmul.f32 -1.442695, %v2771_v35  ;;  %v2083_v22 = vmul.f32 -1.442695, %v2764_v31  ;;  %v1511_v34 = vld [vmem:[%s3076_s10 + $0x10] sm:$0xff] }
 0x24a   :  { %1346 = vadd.xlane.f32.xlu0 %v1345_v51  ;;  %v1452_v55 = vsel %vm764_vm0, %v1450_v18, 0.0  ;;  %v1432_v25 = vsel %vm764_vm0, %v1428_v33, 0.0  ;;  %v2963_v33 = vand.u32 4294901760, %v1512_v30 }
 0x24b   :  { %1384 = vadd.xlane.f32.xlu1 %v1383_v6  ;;  %v1455_v26 = vsel %vm764_vm0, %v1451_v44, 0.0  ;;  %2376 = vpow2.f32 %v2082_v49  ;;  %v1510_v44 = vld [vmem:[%s3076_s10 + $0x8] sm:$0xff] }
 0x24c   :  { %2378 = vpow2.f32 %v2083_v22  ;;  %2289 = vmatprep.subr.mxu0 %v2963_v33  ;;  %v2985_v49 = vand.u32 4294901760, %v1510_v44  ;;  %v1509_v22 = vld [vmem:[%s3076_s10] sm:$0xff] }
 0x24d   :  { %2290 = vmatpush3.msra.mxu0 %v2963_v33 }
 0x24e   :  { %1366 = vadd.xlane.f32.xlu0 %v1365_v15 }
 0x24f   :  { %1407 = vadd.xlane.f32.xlu1 %v1406_v21 }
 0x252   :  { %1387 = vadd.xlane.f32.xlu0 %v1386_v23 }
 0x253   :  { %1430 = vadd.xlane.f32.xlu1 %v1429_v29 }
 0x256   :  { %1410 = vadd.xlane.f32.xlu0 %v1409_v32 }
 0x257   :  { %1453 = vadd.xlane.f32.xlu1 %v1452_v55 }
 0x258   :  { %v2377_v10 = vpop.eup %2376 }
 0x259   :  { %v1491_v59 = vadd.f32 1.0, %v2377_v10  ;;  %v2379_v60 = vpop.eup %2378 }
 0x25a   :  { %1433 = vadd.xlane.f32.xlu0 %v1432_v25  ;;  %v1492_v36 = vadd.f32 1.0, %v2379_v60  ;;  %v2972_v25 = vand.u32 4294901760, %v1511_v34 }
 0x25b   :  { %2380 = vrcp.f32 %v1491_v59 }
 0x25c   :  { %2382 = vrcp.f32 %v1492_v36  ;;  %2291 = vmatprep.subr.mxu0 %v2972_v25 }
 0x25d   :  { %2292 = vmatpush3.msra.mxu0 %v2972_v25 }
 0x25e   :  { %1456 = vadd.xlane.f32.xlu0 %v1455_v26  ;;  %2293 = vmatprep.subr.mxu0 %v2985_v49 }
 0x25f   :  { %2294 = vmatpush3.msra.mxu0 %v2985_v49 }
 0x268   :  { %v2381_v7 = vpop.eup %2380 }
 0x269   :  { %v2383_v28 = vpop.eup %2382 }
 0x2c6   :  { %v1311_v45 = vpop.xlane.xlu0 %1310 }
 0x2c8   :  { %v1308_v40 = vpop.xlane.xlu1 %1307 }
 0x2cb   :  { %v1324_v53 = vpop.xlane.xlu0 %1323 }
 0x2cc   :  { %v1344_v54 = vpop.xlane.xlu1 %1343  ;;  %v1328_v17 = vsel %vm717_vm5, %v1324_v53, 0.0  ;;  %vm1412_vm5 = vcmp.ge.s32.totalorder %v2646_v8, 5  ;;  %v2998_v53 = vsub.f32 %v1510_v44, %v2985_v49 }
 0x2cd   :  { %v1330_v58 = vadd.f32 %v1328_v17, %v1308_v40  ;;  %v1348_v61 = vsel %vm690_vm2, %v1344_v54, 0.0  ;;  %vm1435_vm2 = vcmp.ge.s32.totalorder %v2646_v8, 6  ;;  %v3000_v54 = vand.u32 4294901760, %v1509_v22 }
 0x2cf   :  { %v1327_v56 = vpop.xlane.xlu0 %1326  ;;  %v1350_v0 = vadd.f32 %v1348_v61, %v1330_v58  ;;  %2295 = vmatprep.subr.mxu0 %v3000_v54 }
 0x2d0   :  { %v1364_v57 = vpop.xlane.xlu1 %1363  ;;  %v1329_v43 = vsel %vm718_vm6, %v1327_v56, 0.0  ;;  %vm1458_vm6 = vcmp.ge.s32.totalorder %v2646_v8, 7  ;;  %v1497_v8 = vmul.f32 %v2381_v7, %v2771_v35  ;;  %v2970_v35 = vsub.f32 %v1512_v30, %v2963_v33  ;;  %2296 = vmatpush3.msra.mxu0 %v3000_v54 }
 0x2d1   :  { %v1368_v38 = vsel %vm663_vm1, %v1364_v57, 0.0  ;;  %v1331_v2 = vadd.f32 %v1329_v43, %v1311_v45  ;;  %vm1390_vm1 = vcmp.ge.s32.totalorder %v2651_v9, 4  ;;  %v3007_v56 = vand.u32 4294901760, %v2998_v53 }
 0x2d2   :  { %v1370_v47 = vadd.f32 %v1368_v38, %v1350_v0  ;;  %v2980_v26 = vand.u32 4294901760, %v2970_v35  ;;  %v3010_v57 = vsub.f32 %v1509_v22, %v3000_v54  ;;  %2311 = vmatprep.subr.mxu0 %v2970_v35  ;;  %v2081_v0 = vld [vmem:[#allocation11] ss:$0 sm:$0xff] }
 0x2d3   :  { %v1347_v62 = vpop.xlane.xlu0 %1346  ;;  %v1657_v59 = vsub.f32 %v2998_v53, %v3007_v56 }
 0x2d4   :  { %v1385_v63 = vpop.xlane.xlu1 %1384  ;;  %v1349_v52 = vsel %vm691_vm4, %v1347_v62, 0.0  ;;  %vm1436_vm4 = vcmp.ge.s32.totalorder %v2651_v9, 6  ;;  %v1643_v45 = vsub.f32 %v2970_v35, %v2980_v26  ;;  %v3017_v60 = vand.u32 4294901760, %v3010_v57 }
 0x2d5   :  { %v1391_v42 = vsel %vm1389_vm11, %v1385_v63, 0.0  ;;  %v1351_v11 = vadd.f32 %v1349_v52, %v1331_v2  ;;  %v1658_v61 = vand.u32 4294901760, %v1657_v59 }
 0x2d6   :  { %v1393_v1 = vadd.f32 %v1391_v42, %v1370_v47  ;;  %v1644_v10 = vand.u32 4294901760, %v1643_v45  ;;  %v1664_v62 = vsub.f32 %v3010_v57, %v3017_v60 }
 0x2d7   :  { %v1367_v39 = vpop.xlane.xlu0 %1366 }
 0x2d8   :  { %v1408_v41 = vpop.xlane.xlu1 %1407  ;;  %v1369_v5 = vsel %vm664_vm3, %v1367_v39, 0.0  ;;  %vm1459_vm3 = vcmp.ge.s32.totalorder %v2651_v9, 7  ;;  %v1498_v9 = vmul.f32 %v2383_v28, %v2764_v31  ;;  %v2983_v31 = vsub.f32 %v1511_v34, %v2972_v25  ;;  %2300 = vmatprep.subr.mxu1 %v1644_v10 }
 0x2d9   :  { %v1414_v46 = vsel %vm1412_vm5, %v1408_v41, 0.0  ;;  %v1371_v15 = vadd.f32 %v1369_v5, %v1351_v11  ;;  %2301 = vmatpush3.msra.mxu1 %v1644_v10  ;;  %v1665_v63 = vand.u32 4294901760, %v1664_v62 }
 0x2da   :  { %v1416_v6 = vadd.f32 %v1414_v46, %v1393_v1  ;;  %v2995_v40 = vand.u32 4294901760, %v2983_v31 }
 0x2db   :  { %v1388_v48 = vpop.xlane.xlu0 %1387 }
 0x2dc   :  { %v1431_v51 = vpop.xlane.xlu1 %1430  ;;  %v1392_v13 = vsel %vm1390_vm1, %v1388_v48, 0.0  ;;  %v1650_v17 = vsub.f32 %v2983_v31, %v2995_v40 }
 0x2dd   :  { %v1437_v4 = vsel %vm1435_vm2, %v1431_v51, 0.0  ;;  %v1394_v24 = vadd.f32 %v1392_v13, %v1371_v15  ;;  %v2084_v15 = vld [vmem:[%s3077_s11] ss:$0 sm:$0xff]  ;;  %s2544_s11 = smov [#allocation13]  }
 0x2de   :  { %v1439_v3 = vadd.f32 %v1437_v4, %v1416_v6  ;;  %v1651_v58 = vand.u32 4294901760, %v1650_v17  ;;  %s2061_s0 = sshll.u32 %s2544_s11, 4  ;;  %s2062_s0 = int_to_ptr.vmem [resolvable:$true] %s2061_s0 }
 0x2df   :  { %v1411_v12 = vpop.xlane.xlu0 %1410  ;;  %s2504_s30 = scalar_lea.vmem %s2062_s0, 256  ;;  %p2509_p3 = scmp.lt.s32.totalorder %s2062_s0, %s2062_s0 }
 0x2e0   :  { %v1454_v14 = vpop.xlane.xlu1 %1453  ;;  %v1415_v16 = vsel %vm1413_vm12, %v1411_v12, 0.0  ;;  %2302 = vmatprep.subr.mxu1 %v1651_v58  ;;  %p2505_p2 = scmp.ne.s32.totalorder %s2062_s0, %s2504_s30  ;;  %p2510_p4 = scmp.lt.s32.totalorder %s2504_s30, %s2504_s30 }
 0x2e1   :  { %v1460_v19 = vsel %vm1458_vm6, %v1454_v14, 0.0  ;;  %v1417_v23 = vadd.f32 %v1415_v16, %v1394_v24  ;;  %2303 = vmatpush3.msra.mxu1 %v1651_v58 }
 0x2e2   :  { %v1462_v21 = vadd.f32 %v1460_v19, %v1439_v3  ;;  %2304 = vmatprep.subr.mxu1 %v1658_v61  ;;  %p2511_p5 = por %p2510_p4, %p2509_p3 }
 0x2e3   :  { %v1434_v27 = vpop.xlane.xlu0 %1433  ;;  %2305 = vmatpush3.msra.mxu1 %v1658_v61 }
 0x2e4   :  { %v1438_v20 = vsel %vm1436_vm4, %v1434_v27, 0.0  ;;  %1467 = vperm.xlu1 %2367, %v1462_v21   ;;  %2306 = vmatprep.subr.mxu1 %v1665_v63  ;;  %p2512_p6 = pnand %p2511_p5, %p2505_p2 }
 0x2e5   :  { %v1440_v29 = vadd.f32 %v1438_v20, %v1417_v23  ;;  %2307 = vmatpush3.msra.mxu1 %v1665_v63 }
 0x2e6   :  { %2322 = vmatprep.subr.mxu1 %v2963_v33 }
 0x2e7   :  { %v1457_v18 = vpop.xlane.xlu0 %1456 }
 0x2e8   :  { %v1461_v32 = vsel %vm1459_vm3, %v1457_v18, 0.0  ;;  %1501 = vrot.lane.b32.xlu1 %v1497_v8, %s2543_s6 }
 0x2e9   :  { %v1463_v55 = vadd.f32 %v1461_v32, %v1440_v29 }
 0x2eb   :  { %1472 = vperm.xlu0 %2366, %v1463_v55  }
 0x2ec   :  { %1503 = vrot.lane.b32.xlu1 %v1498_v9, %s2543_s6 }
 0x35f   :  { %v1468_v36 = vpop.permute.xlu1 %1467 }
 0x360   :  { %v1481_v38 = vadd.f32 %v2081_v0, %v1468_v36 }
 0x362   :  { %v1483_v39 = vmul.f32 %v1481_v38, %v2806_v37 }
 0x363   :  { %v1502_v41 = vpop.permute.xlu1 %1501 }
 0x364   :  { %v1507_v42 = vmul.f32 %v1502_v41, %v1483_v39 }
 0x366   :  { %v1521_v43 = vsel %vm764_vm0, %v1507_v42, 0  ;;  %v1473_v47 = vpop.permute.xlu0 %1472 }
 0x367   :  { %v1595_v46 = vand.u32 4294901760, %v1521_v43  ;;  %v1482_v48 = vadd.f32 %v2081_v0, %v1473_v47  ;;  %v1504_v51 = vpop.permute.xlu1 %1503 }
 0x369   :  { %v1596_v52 = vsub.f32 %v1521_v43, %v1595_v46  ;;  %v1484_v1 = vmul.f32 %v1482_v48, %v2808_v50  ;;  %2308 = vmatprep.mubr.f32.mxu1 %v1595_v46 }
 0x36b   :  { %v1508_v2 = vmul.f32 %v1504_v51, %v1484_v1  ;;  %v1597_v4 = vand.u32 4294901760, %v1596_v52 }
 0x36d   :  { %v1524_v5 = vsel %vm764_vm0, %v1508_v2, 0  ;;  %v1598_v6 = vsub.f32 %v1596_v52, %v1597_v4 }
 0x36e   :  { %v1605_v11 = vand.u32 4294901760, %v1524_v5 }
 0x36f   :  { %v1599_v12 = vand.u32 4294901760, %v1598_v6 }
 0x370   :  { %v1606_v37 = vsub.f32 %v1524_v5, %v1605_v11  ;;  %2309 = vmatmul.mubr.f32.vlgmr.msra.gmra.mxu1 %v1605_v11 }
 0x371   :  { %2323 = vmatpush3.msra.mxu1 %v2963_v33  ;;  %2297 = vmatprep.mubr.f32.mxu0 %v1599_v12 }
 0x372   :  { %2324 = vmatprep.subr.mxu1 %v2972_v25  ;;  %2330 = vmatprep.mubr.f32.mxu1 %v1597_v4  ;;  %v1607_v13 = vand.u32 4294901760, %v1606_v37 }
 0x373   :  { %2325 = vmatpush3.msra.mxu1 %v2972_v25 }
 0x374   :  { %2326 = vmatprep.subr.mxu1 %v2985_v49  ;;  %v1608_v50 = vsub.f32 %v1606_v37, %v1607_v13 }
 0x375   :  { %2327 = vmatpush3.msra.mxu1 %v2985_v49 }
 0x376   :  { %2328 = vmatprep.subr.mxu1 %v3000_v54  ;;  %v1609_v3 = vand.u32 4294901760, %v1608_v50 }
 0x377   :  { %2329 = vmatpush3.msra.mxu1 %v3000_v54 }
 0x378   :  { %2331 = vmatmul.mubr.f32.vlgmr.msra.gmra.mxu1 %v1607_v13  ;;  %2344 = vmatprep.subr.mxu1 %v2963_v33 }
 0x379   :  { %2298 = vmatmul.mubr.f32.vlgmr.msra.gmra.mxu0 %v1609_v3  ;;  %2345 = vmatpush3.msra.mxu1 %v2963_v33 }
 0x37a   :  { %2312 = vmatpush3.msra.mxu0 %v2970_v35  ;;  %2352 = vmatprep.mubr.f32.mxu1 %v1595_v46 }
 0x37b   :  { %2313 = vmatprep.subr.mxu0 %v2983_v31  ;;  %2319 = vmatprep.mubr.f32.mxu0 %v1596_v52 }
 0x37c   :  { %2346 = vmatprep.subr.mxu1 %v2972_v25  ;;  %2314 = vmatpush3.msra.mxu0 %v2983_v31 }
 0x37d   :  { %2347 = vmatpush3.msra.mxu1 %v2972_v25  ;;  %2315 = vmatprep.subr.mxu0 %v2998_v53 }
 0x37e   :  { %2348 = vmatprep.subr.mxu1 %v2985_v49  ;;  %2316 = vmatpush3.msra.mxu0 %v2998_v53 }
 0x37f   :  { %2349 = vmatpush3.msra.mxu1 %v2985_v49  ;;  %2317 = vmatprep.subr.mxu0 %v3010_v57 }
 0x380   :  { %2350 = vmatprep.subr.mxu1 %v3000_v54  ;;  %2318 = vmatpush3.msra.mxu0 %v3010_v57 }
 0x381   :  { %2351 = vmatpush3.msra.mxu1 %v3000_v54  ;;  %2320 = vmatmul.mubr.f32.vlgmr.msra.gmra.mxu0 %v1606_v37 }
 0x382   :  { %2333 = vmatprep.subr.mxu0 %v2980_v26  ;;  %2353 = vmatmul.mubr.f32.vlgmr.msra.gmra.mxu1 %v1605_v11 }
 0x383   :  { %2334 = vmatpush3.msra.mxu0 %v2980_v26  ;;  %2341 = vmatprep.mubr.f32.mxu0 %v1595_v46 }
 0x384   :  { %2335 = vmatprep.subr.mxu0 %v2995_v40 }
 0x385   :  { %2336 = vmatpush3.msra.mxu0 %v2995_v40 }
 0x386   :  { %2337 = vmatprep.subr.mxu0 %v3007_v56 }
 0x387   :  { %2338 = vmatpush3.msra.mxu0 %v3007_v56 }
 0x388   :  { %2339 = vmatprep.subr.mxu0 %v3017_v60 }
 0x389   :  { %2340 = vmatpush3.msra.mxu0 %v3017_v60 }
 0x38a   :  { %2342 = vmatmul.mubr.f32.vlgmr.msra.gmra.mxu0 %v1605_v11 }
 0x430   :  { %v2310_v19 = vpop.f32.mrf.mxu1 }
 0x432   :  { %v1702_v27 = vpop.f32.mrf.mxu1 }
 0x438   :  { %v2332_v23 = vpop.f32.mrf.mxu1 }
 0x439   :  { %v2299_v14 = vpop.f32.mrf.mxu0 }
 0x43a   :  { %v1612_v21 = vadd.f32 %v2299_v14, %v2084_v15  ;;  %v1872_v30 = vpop.f32.mrf.mxu1 }
 0x43b   :  { %v1601_v16 = vpop.f32.mrf.mxu0 }
 0x43c   :  { %v1602_v7 = vadd.f32 %v2084_v15, %v1601_v16  ;;  %v1709_v20 = vadd.f32 %v2310_v19, %v1612_v21 }
 0x43e   :  { %v1703_v29 = vadd.f32 %v1702_v27, %v1602_v7 }
 0x441   :  { %v2321_v24 = vpop.f32.mrf.mxu0 }
 0x442   :  { %v1796_v28 = vadd.f32 %v2321_v24, %v1709_v20  ;;  %v2354_v33 = vpop.f32.mrf.mxu1 }
 0x443   :  { %v1788_v8 = vpop.f32.mrf.mxu0 }
 0x444   :  { %v1789_v18 = vadd.f32 %v1788_v8, %v1703_v29  ;;  %v1881_v32 = vadd.f32 %v2332_v23, %v1796_v28  ;;  %v2044_v26 = vpop.f32.mrf.mxu1 }
 0x446   :  { %v1873_v9 = vadd.f32 %v1872_v30, %v1789_v18 }
 0x44a   :  { %v2343_v55 = vpop.f32.mrf.mxu0 }
 0x44b   :  { %v1970_v34 = vadd.f32 %v2343_v55, %v1881_v32 }
 0x44c   :  { %v1963_v35 = vpop.f32.mrf.mxu0 }
 0x44d   :  { %v2051_v25 = vadd.f32 %v2354_v33, %v1970_v34  ;;  %v1964_v44 = vadd.f32 %v1963_v35, %v1873_v9 }
 0x44f   :  { %2055 = vst [vmem:[#allocation13 + $0x8] sm:$0xff] %v2051_v25  ;;  %v2045_v31 = vadd.f32 %v2044_v26, %v1964_v44 }
 0x451   :  { %2054 = vst [vmem:[#allocation13] sm:$0xff] %v2045_v31 }
 0x452   :  { %2515 = shalt.err (!%p2512_p6)
}
 0x453   :  { %2067 = dma.vmem_to_hbm [thread:$0]  %s2062_s0, 256, %s3078_s12, [#allocation4], %s2536_s26, %s2536_s26, %s2537_s27  }
 0x454   :  { %2532 = dma.done.wait [#allocation4], 256  }
 0x455   :  { %2533 = vsyncadd [#allocation4], 4294967040 }
 0x456   :  { %2071 = vsyncpa [#allocation3], 1 }
 0x457   :  { %2072 = vsyncpa [#allocation6], 1 }
 0x458   :  { %2073 = vsyncpa [#allocation9], 1 }
 0x459   :  { %2074 = vsyncpa [#allocation12], 1 }
 0x45a   :  { %2075 = vsyncpa [#allocation4], 1 }

</bundles_post_ra>
